<compile_context>
chip_gen: v7x
topology: tpu7x:2x2x1
jax: 0.10.0
libtpu: 0.0.40
codegen_flags: <defaults>
</compile_context>

<pallas_src>
import jax
import jax.numpy as jnp
from jax.experimental import pallas as pl
from jax.experimental.pallas import tpu as pltpu

# Hidden dims taken from the module definition.
HIDDEN_DIMS_ENC_COMMON = [256, 128]
HIDDEN_DIMS_ENC_IND = [512]
HIDDEN_DIMS_ENC_PRE_Z = [128, 64]

_BN_EPS = 1e-5
_LRELU_SLOPE = 0.01
_SOFTPLUS_THRESH = 20.0
_OUT_PAD = 128  # lane-dense padded output width (unmasked vector stores)

# Merged feature widths.
_D_IND = HIDDEN_DIMS_ENC_IND[0]          # 512
_D_IND_CAT = 2 * _D_IND                  # 1024 (two modalities hstacked)
_D_C0, _D_C1 = HIDDEN_DIMS_ENC_COMMON    # 256, 128
_D_P0, _D_P1 = HIDDEN_DIMS_ENC_PRE_Z     # 128, 64
_D_L0 = 3 * _D_P0                        # 384 (3 heads, layer 0 merged)
_D_L1 = 3 * _D_P1                        # 192 (3 heads, layer 1 block-diag)

# Packed-vector layout (row 0: BN gammas, row 1: BN betas / final bias / mask).
# All segment offsets are multiples of 128 -> lane-aligned static slices.
_OFF_GI = 0
_OFF_GC0 = _OFF_GI + _D_IND_CAT          # 1024
_OFF_GC1 = _OFF_GC0 + _D_C0              # 1280
_OFF_GL0 = _OFF_GC1 + _D_C1              # 1408
_OFF_GL1 = _OFF_GL0 + _D_L0              # 1792
_OFF_BL2 = 2048                          # GL1 segment padded 192 -> 256
_OFF_MASK = _OFF_BL2 + _OUT_PAD          # 2176
_VEC_W = _OFF_MASK + _OUT_PAD            # 2304

_VMEM = pl.BlockSpec(memory_space=pltpu.MemorySpace.VMEM)


# ----------------------------------------------------------------------------
# Fused kernel
# ----------------------------------------------------------------------------
def _encoder_kernel(xin_ref,
                    w_in_ref, w_c0_ref, w_c1_ref,
                    w_l0_ref, w_l1_ref, w_l2_ref,
                    vec_ref, out_ref):
    f32 = jnp.float32
    bf16 = jnp.bfloat16
    inv_n = 1.0 / xin_ref.shape[0]        # static: 1 / batch

    def mm(h, w_ref):
        # bf16 MXU path, f32 accumulation.
        return jnp.dot(h.astype(bf16), w_ref[...], preferred_element_type=f32)

    def bn_lrelu(h, off, width):
        gamma = vec_ref[0:1, off:off + width]
        beta = vec_ref[1:2, off:off + width]
        # One-pass stats: two independent sublane reductions.
        s1 = jnp.sum(h, axis=0, keepdims=True)
        s2 = jnp.sum(h * h, axis=0, keepdims=True)
        mean = s1 * inv_n
        var = jnp.maximum(s2 * inv_n - mean * mean, 0.0)
        y = (h - mean) * jax.lax.rsqrt(var + _BN_EPS) * gamma + beta
        return jnp.where(y >= 0.0, y, _LRELU_SLOPE * y)

    # --- independent input stacks, fused: block-diagonal weight produces the
    #     hstacked (B, 1024) activation from ONE matmul (no cat scratch).
    #     (Linear biases dropped: they cancel inside BatchNorm.)
    h = bn_lrelu(mm(xin_ref[...], w_in_ref), _OFF_GI, _D_IND_CAT)    # (B, 1024)

    # --- common stack: 2x (Linear -> BN -> LeakyReLU) -----------------------
    h = bn_lrelu(mm(h, w_c0_ref), _OFF_GC0, _D_C0)                   # (B, 256)
    h = bn_lrelu(mm(h, w_c1_ref), _OFF_GC1, _D_C1)                   # (B, 128)

    # --- 3 latent heads, merged along the feature axis ----------------------
    h = bn_lrelu(mm(h, w_l0_ref), _OFF_GL0, _D_L0)                   # (B, 384)
    h = bn_lrelu(mm(h, w_l1_ref), _OFF_GL1, _D_L1)                   # (B, 192)

    # --- final linears (with bias): block rows, lane-padded columns ---------
    y = mm(h, w_l2_ref) + vec_ref[1:2, _OFF_BL2:_OFF_BL2 + _OUT_PAD]

    # --- epilogue: softplus (threshold=20) on A/B columns, raw for Z --------
    sp = jnp.where(y > _SOFTPLUS_THRESH, y,
                   jnp.log1p(jnp.exp(jnp.minimum(y, _SOFTPLUS_THRESH))))
    z_mask = vec_ref[1:2, _OFF_MASK:_OFF_MASK + _OUT_PAD]            # 1.0 on Z cols
    out_ref[...] = jnp.where(z_mask > 0.5, y, sp)


# ----------------------------------------------------------------------------
# Wrapper: one grid-less pallas_call for the whole forward
# ----------------------------------------------------------------------------
def encoder_forward(xs, packed, z_dim):
    # Kernel is specialized for exactly 2 input modalities (like the test cfg).
    x0, x1 = xs
    batch = x0.shape[0]
    zp = z_dim + 1
    xin = jnp.concatenate([x0, x1], axis=1)          # (batch, din0 + din1)

    out = pl.pallas_call(
        _encoder_kernel,
        out_shape=jax.ShapeDtypeStruct((batch, _OUT_PAD), jnp.float32),
        in_specs=[_VMEM] * 8,
        out_specs=_VMEM,
        # ~0.9 MiB bf16 weights + tiny activations: fits every generation's
        # default scoped VMEM (incl. v7x) at small batch; revisit if batch
        # is scaled into the thousands.
        compiler_params=pltpu.CompilerParams(vmem_limit_bytes=32 * 1024 * 1024),
    )(
        xin,
        packed["w_in"], packed["w_c0"], packed["w_c1"],
        packed["w_l0"], packed["w_l1"], packed["w_l2"],
        packed["vec"],
    )

    A = out[:, 0:zp]                     # softplus(head0)        (batch, z+1)
    B = out[:, zp:2 * zp].T              # softplus(head1).T      (z+1, batch)
    Z = out[:, 2 * zp:2 * zp + z_dim]    # head2                  (batch, z)
    return A, B, Z


# ----------------------------------------------------------------------------
# Parameter construction (deterministic; shapes follow Encoder.__init__, then
# packed into the merged / block-diagonal / lane-padded kernel layout)
# ----------------------------------------------------------------------------
def make_encoder_params(key, input_sizes, z_dim):
    assert len(input_sizes) == 2, "kernel is specialized for 2 input modalities"
    zp = z_dim + 1
    dims_z = [zp, zp, z_dim]
    off = [0, zp, 2 * zp]
    assert 2 * zp + z_dim <= _OUT_PAD
    d_in_cat = sum(input_sizes)

    def lin_w(k, din, dout):
        b = float(din) ** -0.5
        return jax.random.uniform(k, (din, dout), jnp.float32, -b, b)

    def lin_b(k, din, dout):
        b = float(din) ** -0.5
        return jax.random.uniform(k, (dout,), jnp.float32, -b, b)

    ki = iter(jax.random.split(key, 32))

    # Independent stacks -> ONE block-diagonal (din0+din1, 1024) weight.
    # (Linear biases omitted — they cancel inside BatchNorm's mean subtraction.)
    w_in = jnp.zeros((d_in_cat, _D_IND_CAT), jnp.float32)
    w_in = w_in.at[0:input_sizes[0], 0:_D_IND].set(
        lin_w(next(ki), input_sizes[0], _D_IND))
    w_in = w_in.at[input_sizes[0]:d_in_cat, _D_IND:_D_IND_CAT].set(
        lin_w(next(ki), input_sizes[1], _D_IND))

    # Common stack.
    w_c0 = lin_w(next(ki), _D_IND_CAT, _D_C0)
    w_c1 = lin_w(next(ki), _D_C0, _D_C1)

    # Latent heads: generate per-head, then merge.
    w0s, w1s, w2s, b2s = [], [], [], []
    for k in range(3):
        w0s.append(lin_w(next(ki), _D_C1, _D_P0))
        w1s.append(lin_w(next(ki), _D_P0, _D_P1))
        w2s.append(lin_w(next(ki), _D_P1, dims_z[k]))
        b2s.append(lin_b(next(ki), _D_P1, dims_z[k]))

    # Layer 0 of all heads: concatenate along output features -> (128, 384).
    w_l0 = jnp.concatenate(w0s, axis=1)

    # Layer 1: block-diagonal (384, 192) keeps the three heads independent.
    w_l1 = jnp.zeros((_D_L0, _D_L1), jnp.float32)
    for k in range(3):
        w_l1 = w_l1.at[k * _D_P0:(k + 1) * _D_P0,
                       k * _D_P1:(k + 1) * _D_P1].set(w1s[k])

    # Final linears: block rows, output columns packed + padded to 128 lanes.
    w_l2 = jnp.zeros((_D_L1, _OUT_PAD), jnp.float32)
    bl2 = jnp.zeros((_OUT_PAD,), jnp.float32)
    for k in range(3):
        w_l2 = w_l2.at[k * _D_P1:(k + 1) * _D_P1,
                       off[k]:off[k] + dims_z[k]].set(w2s[k])
        bl2 = bl2.at[off[k]:off[k] + dims_z[k]].set(b2s[k])

    # Packed small vectors: row 0 = BN gammas, row 1 = BN betas | bl2 | Z-mask.
    # Fresh BatchNorm1d params: gamma = 1, beta = 0.
    vec = jnp.zeros((2, _VEC_W), jnp.float32)
    for o, w in ((_OFF_GI, _D_IND_CAT), (_OFF_GC0, _D_C0), (_OFF_GC1, _D_C1),
                 (_OFF_GL0, _D_L0), (_OFF_GL1, _D_L1)):
        vec = vec.at[0, o:o + w].set(1.0)       # gammas (betas stay 0)
    vec = vec.at[1, _OFF_BL2:_OFF_BL2 + _OUT_PAD].set(bl2)
    z_mask = jnp.zeros((_OUT_PAD,), jnp.float32)
    z_mask = z_mask.at[2 * zp:2 * zp + z_dim].set(1.0)
    vec = vec.at[1, _OFF_MASK:_OFF_MASK + _OUT_PAD].set(z_mask)

    # TODO(synk): BatchNorm running statistics are not tracked (training-mode
    # forward only, matching the reference module's default train() state).
    return dict(
        w_in=w_in.astype(jnp.bfloat16),
        w_c0=w_c0.astype(jnp.bfloat16),
        w_c1=w_c1.astype(jnp.bfloat16),
        w_l0=w_l0.astype(jnp.bfloat16),
        w_l1=w_l1.astype(jnp.bfloat16),
        w_l2=w_l2.astype(jnp.bfloat16),
        vec=vec,
    )


# ----------------------------------------------------------------------------
# Main
# ----------------------------------------------------------------------------
if __name__ == "__main__":
    key = jax.random.PRNGKey(0)

    input_sizes = [12, 20]   # two input modalities
    z_dim = 4
    batch = 8                # multiple of 8 -> exact f32 sublane tiling

    key, kp = jax.random.split(key)
    packed = make_encoder_params(kp, input_sizes, z_dim)

    xs = []
    for sz in input_sizes:
        key, kx = jax.random.split(key)
        xs.append(jax.random.normal(kx, (batch, sz), jnp.float32))

    A, B, Z = encoder_forward(xs, packed, z_dim)
    jax.block_until_ready((A, B, Z))

    assert A.shape == (batch, z_dim + 1)
    assert B.shape == (z_dim + 1, batch)
    assert Z.shape == (batch, z_dim)
    assert bool(jnp.all(jnp.isfinite(A))) and bool(jnp.all(jnp.isfinite(B)))
    assert bool(jnp.all(A >= 0.0)) and bool(jnp.all(B >= 0.0))  # softplus >= 0

    print("KERNEL_OK")
</pallas_src>

<mosaic_0001>
module attributes {stable_mosaic.version = 11 : i64} {
  func.func @_encoder_kernel(%arg0: memref<8x32xf32, #tpu.memory_space<vmem>>, %arg1: memref<32x1024xbf16, #tpu.memory_space<vmem>>, %arg2: memref<1024x256xbf16, #tpu.memory_space<vmem>>, %arg3: memref<256x128xbf16, #tpu.memory_space<vmem>>, %arg4: memref<128x384xbf16, #tpu.memory_space<vmem>>, %arg5: memref<384x192xbf16, #tpu.memory_space<vmem>>, %arg6: memref<192x128xbf16, #tpu.memory_space<vmem>>, %arg7: memref<2x2304xf32, #tpu.memory_space<vmem>>, %arg8: memref<8x128xf32, #tpu.memory_space<vmem>>) attributes {dimension_semantics = [], scalar_prefetch = 0 : i64, scratch_operands = 0 : i64, tpu.core_type = #tpu.core_type<tc>} {
    %c0 = arith.constant 0 : index
    %c0_0 = arith.constant 0 : index
    %0 = vector.load %arg0[%c0, %c0_0] : memref<8x32xf32, #tpu.memory_space<vmem>>, vector<8x32xf32>
    %1 = arith.truncf %0 : vector<8x32xf32> to vector<8x32xbf16>
    %c0_1 = arith.constant 0 : index
    %c0_2 = arith.constant 0 : index
    %2 = vector.load %arg1[%c0_1, %c0_2] : memref<32x1024xbf16, #tpu.memory_space<vmem>>, vector<32x1024xbf16>
    %cst = arith.constant dense<0.000000e+00> : vector<8x1024xf32>
    %3 = tpu.matmul %1, %2, %cst {dimension_numbers = #tpu.dot_dimension_numbers<[1], [0], [0], [1], [0, 0, 1, 1], [], []>} : vector<8x32xbf16>, vector<32x1024xbf16>, vector<8x1024xf32> -> vector<8x1024xf32>
    %c0_3 = arith.constant 0 : index
    %c0_4 = arith.constant 0 : index
    %4 = vector.load %arg7[%c0_3, %c0_4] : memref<2x2304xf32, #tpu.memory_space<vmem>>, vector<1x1024xf32>
    %c1 = arith.constant 1 : index
    %c0_5 = arith.constant 0 : index
    %5 = vector.load %arg7[%c1, %c0_5] : memref<2x2304xf32, #tpu.memory_space<vmem>>, vector<1x1024xf32>
    %cst_6 = arith.constant dense<0.000000e+00> : vector<1024xf32>
    %6 = vector.multi_reduction <add>, %3, %cst_6 [0] : vector<8x1024xf32> to vector<1024xf32>
    %7 = vector.shape_cast %6 : vector<1024xf32> to vector<1x1024xf32>
    %8 = arith.mulf %3, %3 : vector<8x1024xf32>
    %cst_7 = arith.constant dense<0.000000e+00> : vector<1024xf32>
    %9 = vector.multi_reduction <add>, %8, %cst_7 [0] : vector<8x1024xf32> to vector<1024xf32>
    %10 = vector.shape_cast %9 : vector<1024xf32> to vector<1x1024xf32>
    %cst_8 = arith.constant 1.250000e-01 : f32
    %11 = vector.broadcast %cst_8 : f32 to vector<1x1024xf32>
    %12 = arith.mulf %7, %11 : vector<1x1024xf32>
    %cst_9 = arith.constant 1.250000e-01 : f32
    %13 = vector.broadcast %cst_9 : f32 to vector<1x1024xf32>
    %14 = arith.mulf %10, %13 : vector<1x1024xf32>
    %15 = arith.mulf %12, %12 : vector<1x1024xf32>
    %16 = arith.subf %14, %15 : vector<1x1024xf32>
    %cst_10 = arith.constant 0.000000e+00 : f32
    %17 = vector.broadcast %cst_10 : f32 to vector<1x1024xf32>
    %18 = arith.maximumf %16, %17 : vector<1x1024xf32>
    %19 = vector.broadcast %12 : vector<1x1024xf32> to vector<8x1024xf32>
    %20 = arith.subf %3, %19 : vector<8x1024xf32>
    %cst_11 = arith.constant 9.99999974E-6 : f32
    %21 = vector.broadcast %cst_11 : f32 to vector<1x1024xf32>
    %22 = arith.addf %18, %21 : vector<1x1024xf32>
    %23 = math.rsqrt %22 : vector<1x1024xf32>
    %24 = vector.broadcast %23 : vector<1x1024xf32> to vector<8x1024xf32>
    %25 = arith.mulf %20, %24 : vector<8x1024xf32>
    %26 = vector.broadcast %4 : vector<1x1024xf32> to vector<8x1024xf32>
    %27 = arith.mulf %25, %26 : vector<8x1024xf32>
    %28 = vector.broadcast %5 : vector<1x1024xf32> to vector<8x1024xf32>
    %29 = arith.addf %27, %28 : vector<8x1024xf32>
    %cst_12 = arith.constant 0.000000e+00 : f32
    %30 = vector.broadcast %cst_12 : f32 to vector<8x1024xf32>
    %31 = arith.cmpf oge, %29, %30 : vector<8x1024xf32>
    %cst_13 = arith.constant 0.00999999977 : f32
    %32 = vector.broadcast %cst_13 : f32 to vector<8x1024xf32>
    %33 = arith.mulf %32, %29 : vector<8x1024xf32>
    %34 = arith.select %31, %29, %33 : vector<8x1024xi1>, vector<8x1024xf32>
    %35 = arith.truncf %34 : vector<8x1024xf32> to vector<8x1024xbf16>
    %c0_14 = arith.constant 0 : index
    %c0_15 = arith.constant 0 : index
    %36 = vector.load %arg2[%c0_14, %c0_15] : memref<1024x256xbf16, #tpu.memory_space<vmem>>, vector<1024x256xbf16>
    %cst_16 = arith.constant dense<0.000000e+00> : vector<8x256xf32>
    %37 = tpu.matmul %35, %36, %cst_16 {dimension_numbers = #tpu.dot_dimension_numbers<[1], [0], [0], [1], [0, 0, 1, 1], [], []>} : vector<8x1024xbf16>, vector<1024x256xbf16>, vector<8x256xf32> -> vector<8x256xf32>
    %c0_17 = arith.constant 0 : index
    %c1024 = arith.constant 1024 : index
    %38 = vector.load %arg7[%c0_17, %c1024] : memref<2x2304xf32, #tpu.memory_space<vmem>>, vector<1x256xf32>
    %c1_18 = arith.constant 1 : index
    %c1024_19 = arith.constant 1024 : index
    %39 = vector.load %arg7[%c1_18, %c1024_19] : memref<2x2304xf32, #tpu.memory_space<vmem>>, vector<1x256xf32>
    %cst_20 = arith.constant dense<0.000000e+00> : vector<256xf32>
    %40 = vector.multi_reduction <add>, %37, %cst_20 [0] : vector<8x256xf32> to vector<256xf32>
    %41 = vector.shape_cast %40 : vector<256xf32> to vector<1x256xf32>
    %42 = arith.mulf %37, %37 : vector<8x256xf32>
    %cst_21 = arith.constant dense<0.000000e+00> : vector<256xf32>
    %43 = vector.multi_reduction <add>, %42, %cst_21 [0] : vector<8x256xf32> to vector<256xf32>
    %44 = vector.shape_cast %43 : vector<256xf32> to vector<1x256xf32>
    %cst_22 = arith.constant 1.250000e-01 : f32
    %45 = vector.broadcast %cst_22 : f32 to vector<1x256xf32>
    %46 = arith.mulf %41, %45 : vector<1x256xf32>
    %cst_23 = arith.constant 1.250000e-01 : f32
    %47 = vector.broadcast %cst_23 : f32 to vector<1x256xf32>
    %48 = arith.mulf %44, %47 : vector<1x256xf32>
    %49 = arith.mulf %46, %46 : vector<1x256xf32>
    %50 = arith.subf %48, %49 : vector<1x256xf32>
    %cst_24 = arith.constant 0.000000e+00 : f32
    %51 = vector.broadcast %cst_24 : f32 to vector<1x256xf32>
    %52 = arith.maximumf %50, %51 : vector<1x256xf32>
    %53 = vector.broadcast %46 : vector<1x256xf32> to vector<8x256xf32>
    %54 = arith.subf %37, %53 : vector<8x256xf32>
    %cst_25 = arith.constant 9.99999974E-6 : f32
    %55 = vector.broadcast %cst_25 : f32 to vector<1x256xf32>
    %56 = arith.addf %52, %55 : vector<1x256xf32>
    %57 = math.rsqrt %56 : vector<1x256xf32>
    %58 = vector.broadcast %57 : vector<1x256xf32> to vector<8x256xf32>
    %59 = arith.mulf %54, %58 : vector<8x256xf32>
    %60 = vector.broadcast %38 : vector<1x256xf32> to vector<8x256xf32>
    %61 = arith.mulf %59, %60 : vector<8x256xf32>
    %62 = vector.broadcast %39 : vector<1x256xf32> to vector<8x256xf32>
    %63 = arith.addf %61, %62 : vector<8x256xf32>
    %cst_26 = arith.constant 0.000000e+00 : f32
    %64 = vector.broadcast %cst_26 : f32 to vector<8x256xf32>
    %65 = arith.cmpf oge, %63, %64 : vector<8x256xf32>
    %cst_27 = arith.constant 0.00999999977 : f32
    %66 = vector.broadcast %cst_27 : f32 to vector<8x256xf32>
    %67 = arith.mulf %66, %63 : vector<8x256xf32>
    %68 = arith.select %65, %63, %67 : vector<8x256xi1>, vector<8x256xf32>
    %69 = arith.truncf %68 : vector<8x256xf32> to vector<8x256xbf16>
    %c0_28 = arith.constant 0 : index
    %c0_29 = arith.constant 0 : index
    %70 = vector.load %arg3[%c0_28, %c0_29] : memref<256x128xbf16, #tpu.memory_space<vmem>>, vector<256x128xbf16>
    %cst_30 = arith.constant dense<0.000000e+00> : vector<8x128xf32>
    %71 = tpu.matmul %69, %70, %cst_30 {dimension_numbers = #tpu.dot_dimension_numbers<[1], [0], [0], [1], [0, 0, 1, 1], [], []>} : vector<8x256xbf16>, vector<256x128xbf16>, vector<8x128xf32> -> vector<8x128xf32>
    %c0_31 = arith.constant 0 : index
    %c1280 = arith.constant 1280 : index
    %72 = vector.load %arg7[%c0_31, %c1280] : memref<2x2304xf32, #tpu.memory_space<vmem>>, vector<1x128xf32>
    %c1_32 = arith.constant 1 : index
    %c1280_33 = arith.constant 1280 : index
    %73 = vector.load %arg7[%c1_32, %c1280_33] : memref<2x2304xf32, #tpu.memory_space<vmem>>, vector<1x128xf32>
    %cst_34 = arith.constant dense<0.000000e+00> : vector<128xf32>
    %74 = vector.multi_reduction <add>, %71, %cst_34 [0] : vector<8x128xf32> to vector<128xf32>
    %75 = vector.shape_cast %74 : vector<128xf32> to vector<1x128xf32>
    %76 = arith.mulf %71, %71 : vector<8x128xf32>
    %cst_35 = arith.constant dense<0.000000e+00> : vector<128xf32>
    %77 = vector.multi_reduction <add>, %76, %cst_35 [0] : vector<8x128xf32> to vector<128xf32>
    %78 = vector.shape_cast %77 : vector<128xf32> to vector<1x128xf32>
    %cst_36 = arith.constant 1.250000e-01 : f32
    %79 = vector.broadcast %cst_36 : f32 to vector<1x128xf32>
    %80 = arith.mulf %75, %79 : vector<1x128xf32>
    %cst_37 = arith.constant 1.250000e-01 : f32
    %81 = vector.broadcast %cst_37 : f32 to vector<1x128xf32>
    %82 = arith.mulf %78, %81 : vector<1x128xf32>
    %83 = arith.mulf %80, %80 : vector<1x128xf32>
    %84 = arith.subf %82, %83 : vector<1x128xf32>
    %cst_38 = arith.constant 0.000000e+00 : f32
    %85 = vector.broadcast %cst_38 : f32 to vector<1x128xf32>
    %86 = arith.maximumf %84, %85 : vector<1x128xf32>
    %87 = vector.broadcast %80 : vector<1x128xf32> to vector<8x128xf32>
    %88 = arith.subf %71, %87 : vector<8x128xf32>
    %cst_39 = arith.constant 9.99999974E-6 : f32
    %89 = vector.broadcast %cst_39 : f32 to vector<1x128xf32>
    %90 = arith.addf %86, %89 : vector<1x128xf32>
    %91 = math.rsqrt %90 : vector<1x128xf32>
    %92 = vector.broadcast %91 : vector<1x128xf32> to vector<8x128xf32>
    %93 = arith.mulf %88, %92 : vector<8x128xf32>
    %94 = vector.broadcast %72 : vector<1x128xf32> to vector<8x128xf32>
    %95 = arith.mulf %93, %94 : vector<8x128xf32>
    %96 = vector.broadcast %73 : vector<1x128xf32> to vector<8x128xf32>
    %97 = arith.addf %95, %96 : vector<8x128xf32>
    %cst_40 = arith.constant 0.000000e+00 : f32
    %98 = vector.broadcast %cst_40 : f32 to vector<8x128xf32>
    %99 = arith.cmpf oge, %97, %98 : vector<8x128xf32>
    %cst_41 = arith.constant 0.00999999977 : f32
    %100 = vector.broadcast %cst_41 : f32 to vector<8x128xf32>
    %101 = arith.mulf %100, %97 : vector<8x128xf32>
    %102 = arith.select %99, %97, %101 : vector<8x128xi1>, vector<8x128xf32>
    %103 = arith.truncf %102 : vector<8x128xf32> to vector<8x128xbf16>
    %c0_42 = arith.constant 0 : index
    %c0_43 = arith.constant 0 : index
    %104 = vector.load %arg4[%c0_42, %c0_43] : memref<128x384xbf16, #tpu.memory_space<vmem>>, vector<128x384xbf16>
    %cst_44 = arith.constant dense<0.000000e+00> : vector<8x384xf32>
    %105 = tpu.matmul %103, %104, %cst_44 {dimension_numbers = #tpu.dot_dimension_numbers<[1], [0], [0], [1], [0, 0, 1, 1], [], []>} : vector<8x128xbf16>, vector<128x384xbf16>, vector<8x384xf32> -> vector<8x384xf32>
    %c0_45 = arith.constant 0 : index
    %c1408 = arith.constant 1408 : index
    %106 = vector.load %arg7[%c0_45, %c1408] : memref<2x2304xf32, #tpu.memory_space<vmem>>, vector<1x384xf32>
    %c1_46 = arith.constant 1 : index
    %c1408_47 = arith.constant 1408 : index
    %107 = vector.load %arg7[%c1_46, %c1408_47] : memref<2x2304xf32, #tpu.memory_space<vmem>>, vector<1x384xf32>
    %cst_48 = arith.constant dense<0.000000e+00> : vector<384xf32>
    %108 = vector.multi_reduction <add>, %105, %cst_48 [0] : vector<8x384xf32> to vector<384xf32>
    %109 = vector.shape_cast %108 : vector<384xf32> to vector<1x384xf32>
    %110 = arith.mulf %105, %105 : vector<8x384xf32>
    %cst_49 = arith.constant dense<0.000000e+00> : vector<384xf32>
    %111 = vector.multi_reduction <add>, %110, %cst_49 [0] : vector<8x384xf32> to vector<384xf32>
    %112 = vector.shape_cast %111 : vector<384xf32> to vector<1x384xf32>
    %cst_50 = arith.constant 1.250000e-01 : f32
    %113 = vector.broadcast %cst_50 : f32 to vector<1x384xf32>
    %114 = arith.mulf %109, %113 : vector<1x384xf32>
    %cst_51 = arith.constant 1.250000e-01 : f32
    %115 = vector.broadcast %cst_51 : f32 to vector<1x384xf32>
    %116 = arith.mulf %112, %115 : vector<1x384xf32>
    %117 = arith.mulf %114, %114 : vector<1x384xf32>
    %118 = arith.subf %116, %117 : vector<1x384xf32>
    %cst_52 = arith.constant 0.000000e+00 : f32
    %119 = vector.broadcast %cst_52 : f32 to vector<1x384xf32>
    %120 = arith.maximumf %118, %119 : vector<1x384xf32>
    %121 = vector.broadcast %114 : vector<1x384xf32> to vector<8x384xf32>
    %122 = arith.subf %105, %121 : vector<8x384xf32>
    %cst_53 = arith.constant 9.99999974E-6 : f32
    %123 = vector.broadcast %cst_53 : f32 to vector<1x384xf32>
    %124 = arith.addf %120, %123 : vector<1x384xf32>
    %125 = math.rsqrt %124 : vector<1x384xf32>
    %126 = vector.broadcast %125 : vector<1x384xf32> to vector<8x384xf32>
    %127 = arith.mulf %122, %126 : vector<8x384xf32>
    %128 = vector.broadcast %106 : vector<1x384xf32> to vector<8x384xf32>
    %129 = arith.mulf %127, %128 : vector<8x384xf32>
    %130 = vector.broadcast %107 : vector<1x384xf32> to vector<8x384xf32>
    %131 = arith.addf %129, %130 : vector<8x384xf32>
    %cst_54 = arith.constant 0.000000e+00 : f32
    %132 = vector.broadcast %cst_54 : f32 to vector<8x384xf32>
    %133 = arith.cmpf oge, %131, %132 : vector<8x384xf32>
    %cst_55 = arith.constant 0.00999999977 : f32
    %134 = vector.broadcast %cst_55 : f32 to vector<8x384xf32>
    %135 = arith.mulf %134, %131 : vector<8x384xf32>
    %136 = arith.select %133, %131, %135 : vector<8x384xi1>, vector<8x384xf32>
    %137 = arith.truncf %136 : vector<8x384xf32> to vector<8x384xbf16>
    %c0_56 = arith.constant 0 : index
    %c0_57 = arith.constant 0 : index
    %138 = vector.load %arg5[%c0_56, %c0_57] : memref<384x192xbf16, #tpu.memory_space<vmem>>, vector<384x192xbf16>
    %cst_58 = arith.constant dense<0.000000e+00> : vector<8x192xf32>
    %139 = tpu.matmul %137, %138, %cst_58 {dimension_numbers = #tpu.dot_dimension_numbers<[1], [0], [0], [1], [0, 0, 1, 1], [], []>} : vector<8x384xbf16>, vector<384x192xbf16>, vector<8x192xf32> -> vector<8x192xf32>
    %c0_59 = arith.constant 0 : index
    %c1792 = arith.constant 1792 : index
    %140 = vector.load %arg7[%c0_59, %c1792] : memref<2x2304xf32, #tpu.memory_space<vmem>>, vector<1x192xf32>
    %c1_60 = arith.constant 1 : index
    %c1792_61 = arith.constant 1792 : index
    %141 = vector.load %arg7[%c1_60, %c1792_61] : memref<2x2304xf32, #tpu.memory_space<vmem>>, vector<1x192xf32>
    %cst_62 = arith.constant dense<0.000000e+00> : vector<192xf32>
    %142 = vector.multi_reduction <add>, %139, %cst_62 [0] : vector<8x192xf32> to vector<192xf32>
    %143 = vector.shape_cast %142 : vector<192xf32> to vector<1x192xf32>
    %144 = arith.mulf %139, %139 : vector<8x192xf32>
    %cst_63 = arith.constant dense<0.000000e+00> : vector<192xf32>
    %145 = vector.multi_reduction <add>, %144, %cst_63 [0] : vector<8x192xf32> to vector<192xf32>
    %146 = vector.shape_cast %145 : vector<192xf32> to vector<1x192xf32>
    %cst_64 = arith.constant 1.250000e-01 : f32
    %147 = vector.broadcast %cst_64 : f32 to vector<1x192xf32>
    %148 = arith.mulf %143, %147 : vector<1x192xf32>
    %cst_65 = arith.constant 1.250000e-01 : f32
    %149 = vector.broadcast %cst_65 : f32 to vector<1x192xf32>
    %150 = arith.mulf %146, %149 : vector<1x192xf32>
    %151 = arith.mulf %148, %148 : vector<1x192xf32>
    %152 = arith.subf %150, %151 : vector<1x192xf32>
    %cst_66 = arith.constant 0.000000e+00 : f32
    %153 = vector.broadcast %cst_66 : f32 to vector<1x192xf32>
    %154 = arith.maximumf %152, %153 : vector<1x192xf32>
    %155 = vector.broadcast %148 : vector<1x192xf32> to vector<8x192xf32>
    %156 = arith.subf %139, %155 : vector<8x192xf32>
    %cst_67 = arith.constant 9.99999974E-6 : f32
    %157 = vector.broadcast %cst_67 : f32 to vector<1x192xf32>
    %158 = arith.addf %154, %157 : vector<1x192xf32>
    %159 = math.rsqrt %158 : vector<1x192xf32>
    %160 = vector.broadcast %159 : vector<1x192xf32> to vector<8x192xf32>
    %161 = arith.mulf %156, %160 : vector<8x192xf32>
    %162 = vector.broadcast %140 : vector<1x192xf32> to vector<8x192xf32>
    %163 = arith.mulf %161, %162 : vector<8x192xf32>
    %164 = vector.broadcast %141 : vector<1x192xf32> to vector<8x192xf32>
    %165 = arith.addf %163, %164 : vector<8x192xf32>
    %cst_68 = arith.constant 0.000000e+00 : f32
    %166 = vector.broadcast %cst_68 : f32 to vector<8x192xf32>
    %167 = arith.cmpf oge, %165, %166 : vector<8x192xf32>
    %cst_69 = arith.constant 0.00999999977 : f32
    %168 = vector.broadcast %cst_69 : f32 to vector<8x192xf32>
    %169 = arith.mulf %168, %165 : vector<8x192xf32>
    %170 = arith.select %167, %165, %169 : vector<8x192xi1>, vector<8x192xf32>
    %171 = arith.truncf %170 : vector<8x192xf32> to vector<8x192xbf16>
    %c0_70 = arith.constant 0 : index
    %c0_71 = arith.constant 0 : index
    %172 = vector.load %arg6[%c0_70, %c0_71] : memref<192x128xbf16, #tpu.memory_space<vmem>>, vector<192x128xbf16>
    %cst_72 = arith.constant dense<0.000000e+00> : vector<8x128xf32>
    %173 = tpu.matmul %171, %172, %cst_72 {dimension_numbers = #tpu.dot_dimension_numbers<[1], [0], [0], [1], [0, 0, 1, 1], [], []>} : vector<8x192xbf16>, vector<192x128xbf16>, vector<8x128xf32> -> vector<8x128xf32>
    %c1_73 = arith.constant 1 : index
    %c2048 = arith.constant 2048 : index
    %174 = vector.load %arg7[%c1_73, %c2048] : memref<2x2304xf32, #tpu.memory_space<vmem>>, vector<1x128xf32>
    %175 = vector.broadcast %174 : vector<1x128xf32> to vector<8x128xf32>
    %176 = arith.addf %173, %175 : vector<8x128xf32>
    %cst_74 = arith.constant 2.000000e+01 : f32
    %177 = vector.broadcast %cst_74 : f32 to vector<8x128xf32>
    %178 = arith.cmpf ogt, %176, %177 : vector<8x128xf32>
    %cst_75 = arith.constant 2.000000e+01 : f32
    %179 = vector.broadcast %cst_75 : f32 to vector<8x128xf32>
    %180 = arith.minimumf %176, %179 : vector<8x128xf32>
    %181 = math.exp %180 : vector<8x128xf32>
    %182 = math.log1p %181 : vector<8x128xf32>
    %183 = arith.select %178, %176, %182 : vector<8x128xi1>, vector<8x128xf32>
    %c1_76 = arith.constant 1 : index
    %c2176 = arith.constant 2176 : index
    %184 = vector.load %arg7[%c1_76, %c2176] : memref<2x2304xf32, #tpu.memory_space<vmem>>, vector<1x128xf32>
    %cst_77 = arith.constant 5.000000e-01 : f32
    %185 = vector.broadcast %cst_77 : f32 to vector<1x128xf32>
    %186 = arith.cmpf ogt, %184, %185 : vector<1x128xf32>
    %187 = vector.shape_cast %186 : vector<1x128xi1> to vector<1x128xi1>
    %188 = vector.broadcast %187 : vector<1x128xi1> to vector<8x128xi1>
    %189 = arith.select %188, %176, %183 : vector<8x128xi1>, vector<8x128xf32>
    %c0_78 = arith.constant 0 : index
    %c0_79 = arith.constant 0 : index
    %190 = vector.load %arg8[%c0_78, %c0_79] : memref<8x128xf32, #tpu.memory_space<vmem>>, vector<8x128xf32>
    tpu.vector_store %arg8[%c0_78, %c0_79], %189 {strides = array<i32>} : memref<8x128xf32, #tpu.memory_space<vmem>>, vector<8x128xf32>,
    return
  }
}

</mosaic_0001>

<bundles_post_ra>
// kernel: tpu_custom_call.1
= control target key start
LH: loop header
LB: loop body
LE: loop exit
PB: predicated region body
PF: predicated region fallthrough
CT: control target
= control target key end

     0   :  { %13 = vsyncpa [#allocation3], 0  ;;  %s4199_s0 = inlined_call_operand.vmem [shape: f32[8,32], index: 0, kind: input, shape index: {}]   ;;  %s4200_s1 = inlined_call_operand.vmem [shape: bf16[32,1024], index: 1, kind: input, shape index: {}]   ;;  %s4201_s2 = inlined_call_operand.hbm [shape: bf16[1024,256], index: 2, kind: input, shape index: {}]   ;;  %s4202_s3 = inlined_call_operand.vmem [shape: bf16[256,128], index: 3, kind: input, shape index: {}]   ;;  %s4203_s4 = inlined_call_operand.vmem [shape: bf16[128,384], index: 4, kind: input, shape index: {}]   ;;  %s4204_s5 = inlined_call_operand.vmem [shape: bf16[384,192], index: 5, kind: input, shape index: {}]   ;;  %s4205_s6 = inlined_call_operand.vmem [shape: bf16[192,128], index: 6, kind: input, shape index: {}]   ;;  %s4206_s7 = inlined_call_operand.vmem [shape: f32[2,2304], index: 7, kind: input, shape index: {}]   ;;  %s4207_s8 = inlined_call_operand.hbm [shape: f32[8,128], index: 8, kind: output, shape index: {}]  }
   0x1   :  { %14 = vsyncpa [#allocation4], 0  ;;  %s3580_s27 = smov [#allocation2]   ;;  %s3532_s9 = scalar_lea.hbm %s4201_s2, 16384 }
   0x2   :  { %s24_s28 = sshll.u32 %s3580_s27, 4  ;;  %p3533_p0 = scmp.ne.s32.totalorder %s4201_s2, %s3532_s9  ;;  %s25_s28 = int_to_ptr.vmem [resolvable:$true] %s24_s28 }
   0x3   :  { %p3536_p1 = scmp.lt.u32.totalorder %s3532_s9, %s4201_s2 }
   0x5   :  { %p3538_p2 = pnand %p3536_p1, %p3533_p0 }
   0x7   :  { %3541 = shalt.err (!%p3538_p2)
}
   0x8   :  { %s3542_s14 = scalar_lea.vmem %s25_s28, 16384  ;;  %p3547_p4 = scmp.lt.s32.totalorder %s25_s28, %s25_s28 }
   0x9   :  { %p3543_p3 = scmp.ne.s32.totalorder %s25_s28, %s3542_s14  ;;  %p3548_p5 = scmp.lt.s32.totalorder %s3542_s14, %s3542_s14 }
   0xb   :  { %p3549_p6 = por %p3548_p5, %p3547_p4 }
   0xd   :  { %p3550_p7 = pnand %p3549_p6, %p3543_p3 }
   0xf   :  { %3553 = shalt.err (!%p3550_p7)
}
  0x10   :  { %s3581_s15 = smov 128   ;;  %s3582_s16 = smov 8  }
  0x11   :  { %30 = dma.hbm_to_vmem [thread:$0]  %s4201_s2, 16384, %s25_s28, [#allocation3], %s3581_s15, %s3581_s15, %s3582_s16  }
  0x12   :  { %3576 = dma.done.wait [#allocation3], 16384  }
  0x13   :  { %3577 = vsyncadd [#allocation3], 4294950912  ;;  %v3583_v0 = vmov 0   ;;  %v47_v1 = vld [vmem:[%s4200_s1] sm:$0xff]  ;;  %v48_v8 = vld [vmem:[%s4200_s1 + $0x8] sm:$0xff]  ;;  %vm143_vm0 = vcmask 261120  }
  0x14   :  { %179 = vmatprep.mubr.bf16.mxu1 %v3583_v0  ;;  %261 = vmatprep.mubr.bf16.mxu0 %v3583_v0  ;;  %v51_v2 = vld [vmem:[%s4200_s1 + $0x20] sm:$0xff]  ;;  %v52_v9 = vld [vmem:[%s4200_s1 + $0x28] sm:$0xff]  ;;  %v49_v10 = vld [vmem:[%s4200_s1 + $0x10] sm:$0xff]  ;;  %vm3585_vm12 = vmmov 0   ;;  %s3586_s15 = smov [#allocation5]  }
  0x15   :  { %v55_v3 = vld [vmem:[%s4200_s1 + $0x40] sm:$0xff]  ;;  %v2840_v4 = vcombine.high %v47_v1, %v51_v2  ;;  %v2839_v5 = vcombine.low %v47_v1, %v51_v2  ;;  %v53_v11 = vld [vmem:[%s4200_s1 + $0x30] sm:$0xff]  ;;  %v2842_v18 = vcombine.high %v48_v8, %v52_v9  ;;  %v56_v20 = vld [vmem:[%s4200_s1 + $0x48] sm:$0xff]  ;;  %v2841_v24 = vcombine.low %v48_v8, %v52_v9 }
  0x16   :  { %v59_v6 = vld [vmem:[%s4200_s1 + $0x60] sm:$0xff]  ;;  %v57_v12 = vld [vmem:[%s4200_s1 + $0x50] sm:$0xff]  ;;  %v2844_v15 = vcombine.high %v49_v10, %v53_v11  ;;  %v2843_v16 = vcombine.low %v49_v10, %v53_v11  ;;  %v60_v21 = vld [vmem:[%s4200_s1 + $0x68] sm:$0xff] }
  0x17   :  { %v2848_v7 = vcombine.high %v55_v3, %v59_v6  ;;  %147 = vmatprep.subr.bf16.mxu1 %v2840_v4  ;;  %v2847_v13 = vcombine.low %v55_v3, %v59_v6  ;;  %v45_v14 = vld [vmem:[%s4199_s0] sm:$0xff]  ;;  %v61_v17 = vld [vmem:[%s4200_s1 + $0x70] sm:$0xff]  ;;  %v2850_v25 = vcombine.high %v56_v20, %v60_v21  ;;  %v50_v27 = vld [vmem:[%s4200_s1 + $0x18] sm:$0xff]  ;;  %v2849_v30 = vcombine.low %v56_v20, %v60_v21 }
  0x18   :  { %148 = vmatpush1.bf16.msra.mxu1 %v2839_v5  ;;  %v2852_v19 = vcombine.high %v57_v12, %v61_v17  ;;  %229 = vmatprep.subr.bf16.mxu0 %v2844_v15  ;;  %v46_v22 = vpack.c.bf16 %v45_v14, %v45_v14  ;;  %v2851_v23 = vcombine.low %v57_v12, %v61_v17  ;;  %v3174_v26 = vld [vmem:[#allocation2 + $0x4] ss:$8 sps:$4 sm:$0xff]   ;;  %v54_v28 = vld [vmem:[%s4200_s1 + $0x38] sm:$0xff]  ;;  %v3172_v29 = vld [vmem:[#allocation2] ss:$8 sps:$4 sm:$0xff]  }
  0x19   :  { %149 = vmatprep.subr.bf16.mxu1 %v2848_v7  ;;  %230 = vmatpush1.bf16.msra.mxu0 %v2843_v16  ;;  %v58_v31 = vld [vmem:[%s4200_s1 + $0x58] sm:$0xff]  ;;  %v2846_v34 = vcombine.high %v50_v27, %v54_v28  ;;  %v3180_v36 = vld [vmem:[#allocation2 + $0x24] ss:$8 sps:$4 sm:$0xff]   ;;  %v2845_v37 = vcombine.low %v50_v27, %v54_v28  ;;  %v3178_v39 = vld [vmem:[#allocation2 + $0x20] ss:$8 sps:$4 sm:$0xff]  }
  0x1a   :  { %231 = vmatprep.subr.bf16.mxu0 %v2852_v19  ;;  %v62_v32 = vld [vmem:[%s4200_s1 + $0x78] sm:$0xff]  ;;  %v3186_v43 = vld [vmem:[#allocation2 + $0x44] ss:$8 sps:$4 sm:$0xff]   ;;  %v3184_v44 = vld [vmem:[#allocation2 + $0x40] ss:$8 sps:$4 sm:$0xff]  }
  0x1b   :  { %v3177_v33 = vld [vmem:[#allocation2 + $0x14] ss:$8 sps:$4 sm:$0xff]   ;;  %v3175_v35 = vld [vmem:[#allocation2 + $0x10] ss:$8 sps:$4 sm:$0xff]   ;;  %v2854_v38 = vcombine.high %v58_v31, %v62_v32  ;;  %v2853_v41 = vcombine.low %v58_v31, %v62_v32  ;;  %v3192_v47 = vld [vmem:[#allocation2 + $0x64] ss:$8 sps:$4 sm:$0xff]  }
  0x1c   :  { %150 = vmatpush1.bf16.msra.mxu1 %v2847_v13  ;;  %v3183_v40 = vld [vmem:[#allocation2 + $0x34] ss:$8 sps:$4 sm:$0xff]   ;;  %v3181_v42 = vld [vmem:[#allocation2 + $0x30] ss:$8 sps:$4 sm:$0xff]   ;;  %v3190_v48 = vld [vmem:[#allocation2 + $0x60] ss:$8 sps:$4 sm:$0xff]  }
  0x1d   :  { %188 = vmatprep.subr.bf16.mxu1 %v2842_v18  ;;  %232 = vmatpush1.bf16.msra.mxu0 %v2851_v23  ;;  %v3189_v45 = vld [vmem:[#allocation2 + $0x54] ss:$8 sps:$4 sm:$0xff]   ;;  %v3187_v46 = vld [vmem:[#allocation2 + $0x50] ss:$8 sps:$4 sm:$0xff]   ;;  %v3198_v51 = vld [vmem:[#allocation2 + $0x84] ss:$8 sps:$4 sm:$0xff]  }
  0x1e   :  { %1388 = vmatprep.subr.bf16.mxu0 %v3174_v26  ;;  %v3195_v49 = vld [vmem:[#allocation2 + $0x74] ss:$8 sps:$4 sm:$0xff]   ;;  %v3193_v50 = vld [vmem:[#allocation2 + $0x70] ss:$8 sps:$4 sm:$0xff]   ;;  %v3196_v52 = vld [vmem:[#allocation2 + $0x80] ss:$8 sps:$4 sm:$0xff]  }
  0x1f   :  { %2855 = vmatmul.mubr.msk.bf16.vlgmr.msra.gmra.mrb[0].mxu1 %vm143_vm0, %v46_v22  ;;  %v3201_v53 = vld [vmem:[#allocation2 + $0x94] ss:$8 sps:$4 sm:$0xff]   ;;  %v3199_v54 = vld [vmem:[#allocation2 + $0x90] ss:$8 sps:$4 sm:$0xff]   ;;  %v3204_v55 = vld [vmem:[#allocation2 + $0xa4] ss:$8 sps:$4 sm:$0xff]  }
  0x20   :  { %189 = vmatpush1.bf16.msra.mxu1 %v2841_v24  ;;  %220 = vmatprep.mubr.bf16.mxu1 %v3583_v0  ;;  %v3202_v56 = vld [vmem:[#allocation2 + $0xa0] ss:$8 sps:$4 sm:$0xff]   ;;  %v3207_v57 = vld [vmem:[#allocation2 + $0xb4] ss:$8 sps:$4 sm:$0xff]   ;;  %v3205_v58 = vld [vmem:[#allocation2 + $0xb0] ss:$8 sps:$4 sm:$0xff]  }
  0x21   :  { %190 = vmatprep.subr.bf16.mxu1 %v2850_v25  ;;  %2857 = vmatmul.mubr.msk.bf16.vlgmr.msra.gmra.mrb[0].mxu0 %vm143_vm0, %v46_v22  ;;  %v3210_v59 = vld [vmem:[#allocation2 + $0xc4] ss:$8 sps:$4 sm:$0xff]   ;;  %v3208_v60 = vld [vmem:[#allocation2 + $0xc0] ss:$8 sps:$4 sm:$0xff]   ;;  %v3213_v61 = vld [vmem:[#allocation2 + $0xd4] ss:$8 sps:$4 sm:$0xff]  }
  0x22   :  { %1389 = vmatpush1.bf16.msra.mxu0 %v3172_v29  ;;  %v3211_v62 = vld [vmem:[#allocation2 + $0xd0] ss:$8 sps:$4 sm:$0xff]   ;;  %v3216_v63 = vld [vmem:[#allocation2 + $0xe4] ss:$8 sps:$4 sm:$0xff]   ;;  %v3214_v1 = vld [vmem:[#allocation2 + $0xe0] ss:$8 sps:$4 sm:$0xff]  }
  0x23   :  { %1390 = vmatprep.subr.bf16.mxu0 %v3177_v33  ;;  %v3219_v2 = vld [vmem:[#allocation2 + $0xf4] ss:$8 sps:$4 sm:$0xff]   ;;  %v3217_v3 = vld [vmem:[#allocation2 + $0xf0] ss:$8 sps:$4 sm:$0xff]   ;;  %v3222_v4 = vld [vmem:[#allocation2 + $0x104] ss:$8 sps:$4 sm:$0xff]  }
  0x24   :  { %191 = vmatpush1.bf16.msra.mxu1 %v2849_v30 }
  0x25   :  { %270 = vmatprep.subr.bf16.mxu1 %v2846_v34 }
  0x26   :  { %1391 = vmatpush1.bf16.msra.mxu0 %v3175_v35 }
  0x27   :  { %2856 = vmatmul.mubr.msk.bf16.vlgmr.msra.gmra.mrb[4].mxu1 %vm143_vm0, %v46_v22  ;;  %1392 = vmatprep.subr.bf16.mxu0 %v3180_v36 }
  0x28   :  { %271 = vmatpush1.bf16.msra.mxu1 %v2845_v37  ;;  %302 = vmatprep.mubr.bf16.mxu1 %v3583_v0 }
  0x29   :  { %272 = vmatprep.subr.bf16.mxu1 %v2854_v38 }
  0x2a   :  { %1393 = vmatpush1.bf16.msra.mxu0 %v3178_v39 }
  0x2b   :  { %1394 = vmatprep.subr.bf16.mxu0 %v3183_v40 }
  0x2c   :  { %273 = vmatpush1.bf16.msra.mxu1 %v2853_v41 }
  0x2e   :  { %1395 = vmatpush1.bf16.msra.mxu0 %v3181_v42 }
  0x2f   :  { %2858 = vmatmul.mubr.msk.bf16.vlgmr.msra.gmra.mrb[8].mxu1 %vm143_vm0, %v46_v22  ;;  %1396 = vmatprep.subr.bf16.mxu0 %v3186_v43  ;;  %vm2581_vm0 = vcmask 523264  }
  0x32   :  { %1397 = vmatpush1.bf16.msra.mxu0 %v3184_v44 }
  0x33   :  { %1398 = vmatprep.subr.bf16.mxu0 %v3189_v45 }
  0x36   :  { %1399 = vmatpush1.bf16.msra.mxu0 %v3187_v46 }
  0x37   :  { %1400 = vmatprep.subr.bf16.mxu0 %v3192_v47 }
  0x3a   :  { %1401 = vmatpush1.bf16.msra.mxu0 %v3190_v48 }
  0x3b   :  { %1402 = vmatprep.subr.bf16.mxu0 %v3195_v49 }
  0x3e   :  { %1403 = vmatpush1.bf16.msra.mxu0 %v3193_v50 }
  0x3f   :  { %1404 = vmatprep.subr.bf16.mxu0 %v3198_v51 }
  0x42   :  { %1405 = vmatpush1.bf16.msra.mxu0 %v3196_v52 }
  0x43   :  { %1406 = vmatprep.subr.bf16.mxu0 %v3201_v53 }
  0x46   :  { %1407 = vmatpush1.bf16.msra.mxu0 %v3199_v54 }
  0x47   :  { %1408 = vmatprep.subr.bf16.mxu0 %v3204_v55 }
  0x4a   :  { %1409 = vmatpush1.bf16.msra.mxu0 %v3202_v56 }
  0x4b   :  { %1410 = vmatprep.subr.bf16.mxu0 %v3207_v57 }
  0x4e   :  { %1411 = vmatpush1.bf16.msra.mxu0 %v3205_v58 }
  0x4f   :  { %1412 = vmatprep.subr.bf16.mxu0 %v3210_v59 }
  0x52   :  { %1413 = vmatpush1.bf16.msra.mxu0 %v3208_v60  ;;  %v491_v60 = vlaneseq }
  0x53   :  { %1414 = vmatprep.subr.bf16.mxu0 %v3213_v61 }
  0x56   :  { %1415 = vmatpush1.bf16.msra.mxu0 %v3211_v62 }
  0x57   :  { %1416 = vmatprep.subr.bf16.mxu0 %v3216_v63 }
  0x5a   :  { %1417 = vmatpush1.bf16.msra.mxu0 %v3214_v1 }
  0x5b   :  { %1418 = vmatprep.subr.bf16.mxu0 %v3219_v2 }
  0x5e   :  { %1419 = vmatpush1.bf16.msra.mxu0 %v3217_v3 }
  0x5f   :  { %1429 = vmatprep.subr.bf16.mxu0 %v3222_v4 }
  0xf2   :  { %v3703_v5 = vpop.f32.mrb[0].mxu1 }
  0xf3   :  { %v314_v6 = vrot.slane %v3703_v5, 4  ;;  %v362_v7 = vmul.f32 %v3703_v5, %v3703_v5  ;;  %v3708_v8 = vpop.f32.mrb[1].mxu1 }
  0xf4   :  { %v320_v9 = vrot.slane %v3708_v8, 4  ;;  %v363_v10 = vmul.f32 %v3708_v8, %v3708_v8  ;;  %v185_v11 = vpop.f32.mrb[2].mxu1  ;;  %v3714_v15 = vpop.f32.mrb[0].mxu0 }
  0xf5   :  { %v315_v12 = vadd.f32 %v314_v6, %v3703_v5  ;;  %v370_v13 = vrot.slane %v362_v7, 4  ;;  %v186_v14 = vpop.f32.mrb[3].mxu1  ;;  %v3717_v18 = vpop.f32.mrb[1].mxu0  ;;  %v3727_v6 = vshrl.u32 %v491_v60, 7  ;;  %v3220_v60 = vld [vmem:[#allocation2 + $0x100] ss:$8 sps:$4 sm:$0xff]  }
  0xf6   :  { %v321_v16 = vadd.f32 %v320_v9, %v3708_v8  ;;  %v376_v17 = vrot.slane %v363_v10, 4  ;;  %v267_v21 = vpop.f32.mrb[2].mxu0 }
  0xf7   :  { %v316_v19 = vrot.slane %v315_v12, 2  ;;  %v371_v20 = vadd.f32 %v370_v13, %v362_v7  ;;  %v268_v24 = vpop.f32.mrb[3].mxu0  ;;  %v3735_v13 = vld [vmem:[%s4206_s7] ss:$2 sm:$0xff] }
  0xf8   :  { %v322_v22 = vrot.slane %v321_v16, 2  ;;  %v377_v23 = vadd.f32 %v376_v17, %v363_v10  ;;  %v3740_v17 = vsub.s32 1, %v3727_v6 }
  0xf9   :  { %v317_v25 = vadd.f32 %v316_v19, %v315_v12  ;;  %v372_v26 = vrot.slane %v371_v20, 2  ;;  %v3730_v12 = vsub.s32 0, %v3727_v6 }
  0xfa   :  { %v323_v27 = vadd.f32 %v322_v22, %v321_v16  ;;  %v378_v28 = vrot.slane %v377_v23, 2  ;;  %v3719_v29 = vpop.f32.mrb[4].mxu1  ;;  %v3747_v22 = vld [vmem:[%s4206_s7 + $0x1] ss:$2 sm:$0xff] }
  0xfb   :  { %v318_v30 = vrot.slane %v317_v25, 1  ;;  %v373_v31 = vadd.f32 %v372_v26, %v371_v20  ;;  %v3721_v32 = vpop.f32.mrb[5].mxu1  ;;  %v326_v24 = vrot.slane %v3719_v29, 4 }
  0xfc   :  { %v324_v33 = vrot.slane %v323_v27, 1  ;;  %v379_v34 = vadd.f32 %v378_v28, %v377_v23  ;;  %v332_v35 = vrot.slane %v3721_v32, 4  ;;  %v365_v36 = vmul.f32 %v3721_v32, %v3721_v32  ;;  %v226_v37 = vpop.f32.mrb[6].mxu1 }
  0xfd   :  { %v319_v38 = vadd.f32 %v318_v30, %v317_v25  ;;  %v374_v39 = vrot.slane %v373_v31, 1  ;;  %v227_v40 = vpop.f32.mrb[7].mxu1  ;;  %v494_v23 = vrot.slane %v3735_v13, %v3730_v12  ;;  %v344_v28 = vrot.slane %v3717_v18, 4 }
  0xfe   :  { %v325_v41 = vadd.f32 %v324_v33, %v323_v27  ;;  %v380_v42 = vrot.slane %v379_v34, 1  ;;  %v333_v43 = vadd.f32 %v332_v35, %v3721_v32  ;;  %v388_v44 = vrot.slane %v365_v36, 4 }
  0xff   :  { %v375_v45 = vadd.f32 %v374_v39, %v373_v31  ;;  %v418_v46 = vmul.f32 0.125, %v319_v38  ;;  %v367_v30 = vmul.f32 %v3717_v18, %v3717_v18  ;;  %v364_v35 = vmul.f32 %v3719_v29, %v3719_v29 }
 0x100   :  { %v381_v47 = vadd.f32 %v380_v42, %v379_v34  ;;  %v419_v48 = vmul.f32 0.125, %v325_v41  ;;  %v334_v49 = vrot.slane %v333_v43, 2  ;;  %v389_v50 = vadd.f32 %v388_v44, %v365_v36 }
 0x101   :  { %v426_v51 = vmul.f32 0.125, %v375_v45  ;;  %v434_v52 = vmul.f32 %v418_v46, %v418_v46  ;;  %v458_v26 = vsub.f32 %v3703_v5, %v418_v46  ;;  %v498_v34 = vrot.slane %v3735_v13, %v3740_v17 }
 0x102   :  { %v427_v53 = vmul.f32 0.125, %v381_v47  ;;  %v435_v54 = vmul.f32 %v419_v48, %v419_v48  ;;  %v335_v56 = vadd.f32 %v334_v49, %v333_v43  ;;  %v390_v57 = vrot.slane %v389_v50, 2  ;;  %v3737_v16 = vpop.f32.mrb[8].mxu1 }
 0x103   :  { %v442_v55 = vsub.f32 %v426_v51, %v434_v52  ;;  %v3742_v19 = vpop.f32.mrb[9].mxu1  ;;  %v459_v33 = vsub.f32 %v3708_v8, %v419_v48  ;;  %v543_v5 = vrot.slane %v3747_v22, %v3730_v12  ;;  %v327_v39 = vadd.f32 %v326_v24, %v3719_v29 }
 0x104   :  { %v443_v58 = vsub.f32 %v427_v53, %v435_v54  ;;  %v336_v61 = vrot.slane %v335_v56, 1  ;;  %v391_v62 = vadd.f32 %v390_v57, %v389_v50  ;;  %v308_v21 = vpop.f32.mrb[10].mxu1  ;;  %v547_v40 = vrot.slane %v3747_v22, %v3740_v17 }
 0x105   :  { %v450_v59 = vmax.f32 %v442_v55, 0.0  ;;  %v309_v25 = vpop.f32.mrb[11].mxu1  ;;  %v345_v8 = vadd.f32 %v344_v28, %v3717_v18  ;;  %v400_v42 = vrot.slane %v367_v30, 4  ;;  %v382_v44 = vrot.slane %v364_v35, 4  ;;  %v3228_v21 = vld [vmem:[#allocation2 + $0x124] ss:$8 sps:$4 sm:$0xff]  }
 0x106   :  { %v451_v63 = vmax.f32 %v443_v58, 0.0  ;;  %v337_v2 = vadd.f32 %v336_v61, %v335_v56  ;;  %v392_v3 = vrot.slane %v391_v62, 1  ;;  %v328_v46 = vrot.slane %v327_v39, 2  ;;  %v3226_v25 = vld [vmem:[#allocation2 + $0x120] ss:$8 sps:$4 sm:$0xff]  }
 0x107   :  { %v466_v1 = vadd.f32 1e-05, %v450_v59  ;;  %v505_v47 = vsub.s32 3, %v3727_v6  ;;  %v346_v50 = vrot.slane %v345_v8, 2  ;;  %v401_v51 = vadd.f32 %v400_v42, %v367_v30 }
 0x108   :  { %v467_v4 = vadd.f32 1e-05, %v451_v63  ;;  %v393_v7 = vadd.f32 %v392_v3, %v391_v62  ;;  %v421_v9 = vmul.f32 0.125, %v337_v2  ;;  %v383_v52 = vadd.f32 %v382_v44, %v364_v35  ;;  %v3229_v35 = vld [vmem:[#allocation2 + $0x130] ss:$8 sps:$4 sm:$0xff]  }
 0x109   :  { %3496 = vrsqrt.f32 %v466_v1  ;;  %v506_v56 = vrot.slane %v3735_v13, %v505_v47  ;;  %v555_v61 = vrot.slane %v3747_v22, %v505_v47  ;;  %v347_v62 = vadd.f32 %v346_v50, %v345_v8  ;;  %v3237_v44 = vld [vmem:[#allocation2 + $0x154] ss:$8 sps:$4 sm:$0xff]  }
 0x10a   :  { %3498 = vrsqrt.f32 %v467_v4  ;;  %v429_v10 = vmul.f32 0.125, %v393_v7  ;;  %v437_v11 = vmul.f32 %v421_v9, %v421_v9  ;;  %v461_v53 = vsub.f32 %v3721_v32, %v421_v9  ;;  %v3225_v7 = vld [vmem:[#allocation2 + $0x114] ss:$8 sps:$4 sm:$0xff]   ;;  %v3223_v9 = vld [vmem:[#allocation2 + $0x110] ss:$8 sps:$4 sm:$0xff]  }
 0x10b   :  { %v402_v63 = vrot.slane %v401_v51, 2  ;;  %v329_v1 = vadd.f32 %v328_v46, %v327_v39  ;;  %v384_v2 = vrot.slane %v383_v52, 2  ;;  %v3234_v39 = vld [vmem:[#allocation2 + $0x144] ss:$8 sps:$4 sm:$0xff]  }
 0x10c   :  { %v445_v14 = vsub.f32 %v429_v10, %v437_v11  ;;  %v348_v10 = vrot.slane %v347_v62, 1 }
 0x10d   :  { %v403_v11 = vadd.f32 %v402_v63, %v401_v51 }
 0x10e   :  { %v453_v20 = vmax.f32 %v445_v14, 0.0  ;;  %v330_v14 = vrot.slane %v329_v1, 1 }
 0x110   :  { %v469_v27 = vadd.f32 1e-05, %v453_v20  ;;  %v385_v20 = vadd.f32 %v384_v2, %v383_v52  ;;  %v331_v28 = vadd.f32 %v330_v14, %v329_v1  ;;  %v3243_v52 = vld [vmem:[#allocation2 + $0x174] ss:$8 sps:$4 sm:$0xff]   ;;  %v513_v1 = vsub.s32 5, %v3727_v6 }
 0x112   :  { %3500 = vrsqrt.f32 %v469_v27  ;;  %v404_v27 = vrot.slane %v403_v11, 1  ;;  %v386_v30 = vrot.slane %v385_v20, 1 }
 0x113   :  { %v3497_v31 = vpop.eup %3496 }
 0x114   :  { %v3499_v36 = vpop.eup %3498  ;;  %v482_v37 = vmul.f32 %v3497_v31, %v458_v26  ;;  %v349_v26 = vadd.f32 %v348_v10, %v347_v62  ;;  %v3231_v31 = vld [vmem:[#allocation2 + $0x134] ss:$8 sps:$4 sm:$0xff]  }
 0x115   :  { %v483_v38 = vmul.f32 %v3499_v36, %v459_v33  ;;  %v405_v36 = vadd.f32 %v404_v27, %v403_v11  ;;  %v3255_v62 = vld [vmem:[#allocation2 + $0x1b4] ss:$8 sps:$4 sm:$0xff]   ;;  %v514_v11 = vrot.slane %v3735_v13, %v513_v1  ;;  %v356_v27 = vrot.slane %v3742_v19, 4 }
 0x116   :  { %v531_v41 = vmul.f32 %v494_v23, %v482_v37  ;;  %v423_v37 = vmul.f32 0.125, %v349_v26  ;;  %v3259_v26 = vld [vmem:[#allocation2 + $0x1d0] ss:$8 sps:$4 sm:$0xff]  }
 0x117   :  { %v532_v43 = vmul.f32 %v498_v34, %v483_v38  ;;  %v420_v38 = vmul.f32 0.125, %v331_v28  ;;  %v369_v28 = vmul.f32 %v3742_v19, %v3742_v19 }
 0x118   :  { %v580_v45 = vadd.f32 %v543_v5, %v531_v41  ;;  %v387_v5 = vadd.f32 %v386_v30, %v385_v20  ;;  %v431_v41 = vmul.f32 0.125, %v405_v36  ;;  %v439_v8 = vmul.f32 %v423_v37, %v423_v37  ;;  %v3256_v20 = vld [vmem:[#allocation2 + $0x1c0] ss:$8 sps:$4 sm:$0xff]  }
 0x119   :  { %v581_v48 = vadd.f32 %v547_v40, %v532_v43  ;;  %v3232_v40 = vld [vmem:[#allocation2 + $0x140] ss:$8 sps:$4 sm:$0xff]   ;;  %v436_v43 = vmul.f32 %v420_v38, %v420_v38  ;;  %v463_v63 = vsub.f32 %v3717_v18, %v423_v37  ;;  %v338_v30 = vrot.slane %v3714_v15, 4 }
 0x11a   :  { %vm588_vm1 = vcmp.ge.f32.partialorder %v580_v45, 0.0  ;;  %v596_v49 = vmul.f32 0.01, %v580_v45  ;;  %v428_v42 = vmul.f32 0.125, %v387_v5  ;;  %v447_v46 = vsub.f32 %v431_v41, %v439_v8  ;;  %v3262_v36 = vld [vmem:[#allocation2 + $0x1e0] ss:$8 sps:$4 sm:$0xff]  }
 0x11b   :  { %vm589_vm2 = vcmp.ge.f32.partialorder %v581_v48, 0.0  ;;  %v597_v54 = vmul.f32 0.01, %v581_v48  ;;  %v357_v37 = vadd.f32 %v356_v27, %v3742_v19  ;;  %v412_v5 = vrot.slane %v369_v28, 4  ;;  %v3285_v27 = vld [vmem:[#allocation2 + $0x254] ss:$8 sps:$4 sm:$0xff]  }
 0x11c   :  { %v604_v55 = vsel %vm588_vm1, %v580_v45, %v596_v49  ;;  %v3501_v58 = vpop.eup %3500  ;;  %v3235_v45 = vld [vmem:[#allocation2 + $0x150] ss:$8 sps:$4 sm:$0xff]   ;;  %v444_v47 = vsub.f32 %v428_v42, %v436_v43  ;;  %v3238_v49 = vld [vmem:[#allocation2 + $0x160] ss:$8 sps:$4 sm:$0xff]   ;;  %v455_v50 = vmax.f32 %v447_v46, 0.0 }
 0x11d   :  { %v605_v57 = vsel %vm589_vm2, %v581_v48, %v597_v54  ;;  %v485_v3 = vmul.f32 %v3501_v58, %v461_v53  ;;  %v612_v4 = vpack.c.bf16 %v604_v55, %v604_v55  ;;  %v3240_v48 = vld [vmem:[#allocation2 + $0x164] ss:$8 sps:$4 sm:$0xff]   ;;  %v3241_v53 = vld [vmem:[#allocation2 + $0x170] ss:$8 sps:$4 sm:$0xff]   ;;  %v3249_v58 = vld [vmem:[#allocation2 + $0x194] ss:$8 sps:$4 sm:$0xff]  }
 0x11e   :  { %v613_v59 = vpack.c.bf16 %v605_v57, %v605_v57  ;;  %v452_v51 = vmax.f32 %v444_v47, 0.0  ;;  %v471_v54 = vadd.f32 1e-05, %v455_v50  ;;  %v3244_v57 = vld [vmem:[#allocation2 + $0x180] ss:$8 sps:$4 sm:$0xff]   ;;  %v358_v43 = vrot.slane %v357_v37, 2 }
 0x11f   :  { %v534_v32 = vmul.f32 %v506_v56, %v485_v3  ;;  %v3246_v56 = vld [vmem:[#allocation2 + $0x184] ss:$8 sps:$4 sm:$0xff]   ;;  %v460_v3 = vsub.f32 %v3719_v29, %v420_v38  ;;  %v3261_v29 = vld [vmem:[#allocation2 + $0x1d4] ss:$8 sps:$4 sm:$0xff]   ;;  %v339_v38 = vadd.f32 %v338_v30, %v3714_v15  ;;  %v3265_v42 = vld [vmem:[#allocation2 + $0x1f0] ss:$8 sps:$4 sm:$0xff]  }
 0x120   :  { %1420 = vmatprep.mubr.bf16.mxu0 %v613_v59  ;;  %v468_v55 = vadd.f32 1e-05, %v452_v51  ;;  %3502 = vrsqrt.f32 %v471_v54  ;;  %v3247_v59 = vld [vmem:[#allocation2 + $0x190] ss:$8 sps:$4 sm:$0xff]   ;;  %v3270_v47 = vld [vmem:[#allocation2 + $0x204] ss:$8 sps:$4 sm:$0xff]  }
 0x121   :  { %1421 = vmatmul.mubr.bf16.vlgmr.msra.gmra.mrb[4].mxu0 %v612_v4  ;;  %v583_v23 = vadd.f32 %v555_v61, %v534_v32  ;;  %v3250_v61 = vld [vmem:[#allocation2 + $0x1a0] ss:$8 sps:$4 sm:$0xff]   ;;  %v3775_v4 = vsub.s32 2, %v3727_v6  ;;  %v3253_v32 = vld [vmem:[#allocation2 + $0x1b0] ss:$8 sps:$4 sm:$0xff]  }
 0x122   :  { %1430 = vmatpush1.bf16.msra.mxu0 %v3220_v60  ;;  %3504 = vrsqrt.f32 %v468_v55  ;;  %v3252_v60 = vld [vmem:[#allocation2 + $0x1a4] ss:$8 sps:$4 sm:$0xff]   ;;  %v3268_v50 = vld [vmem:[#allocation2 + $0x200] ss:$8 sps:$4 sm:$0xff]  }
 0x123   :  { %1431 = vmatprep.subr.bf16.mxu0 %v3225_v7  ;;  %vm591_vm3 = vcmp.ge.f32.partialorder %v583_v23, 0.0  ;;  %v599_v24 = vmul.f32 0.01, %v583_v23  ;;  %v502_v18 = vrot.slane %v3735_v13, %v3775_v4 }
 0x125   :  { %v607_v33 = vsel %vm591_vm3, %v583_v23, %v599_v24  ;;  %v563_v23 = vrot.slane %v3747_v22, %v513_v1  ;;  %v3274_v1 = vld [vmem:[#allocation2 + $0x220] ss:$8 sps:$4 sm:$0xff]  }
 0x126   :  { %1432 = vmatpush1.bf16.msra.mxu0 %v3223_v9  ;;  %v615_v34 = vpack.c.bf16 %v607_v33, %v607_v33  ;;  %v3258_v9 = vld [vmem:[#allocation2 + $0x1c4] ss:$8 sps:$4 sm:$0xff]  }
 0x127   :  { %1433 = vmatprep.subr.bf16.mxu0 %v3228_v21  ;;  %v3264_v33 = vld [vmem:[#allocation2 + $0x1e4] ss:$8 sps:$4 sm:$0xff]  }
 0x128   :  { %1461 = vmatprep.mubr.bf16.mxu0 %v615_v34 }
 0x12a   :  { %1434 = vmatpush1.bf16.msra.mxu0 %v3226_v25  ;;  %v3503_v2 = vpop.eup %3502  ;;  %v551_v25 = vrot.slane %v3747_v22, %v3775_v4 }
 0x12b   :  { %1435 = vmatprep.subr.bf16.mxu0 %v3231_v31  ;;  %v487_v10 = vmul.f32 %v3503_v2, %v463_v63  ;;  %v366_v31 = vmul.f32 %v3714_v15, %v3714_v15  ;;  %v3276_v63 = vld [vmem:[#allocation2 + $0x224] ss:$8 sps:$4 sm:$0xff]  }
 0x12c   :  { %v3505_v7 = vpop.eup %3504 }
 0x12d   :  { %v484_v14 = vmul.f32 %v3505_v7, %v460_v3  ;;  %v536_v21 = vmul.f32 %v514_v11, %v487_v10  ;;  %v3277_v10 = vld [vmem:[#allocation2 + $0x230] ss:$8 sps:$4 sm:$0xff]  }
 0x12e   :  { %1436 = vmatpush1.bf16.msra.mxu0 %v3229_v35 }
 0x12f   :  { %1437 = vmatprep.subr.bf16.mxu0 %v3234_v39  ;;  %v533_v24 = vmul.f32 %v502_v18, %v484_v14  ;;  %v585_v34 = vadd.f32 %v563_v23, %v536_v21  ;;  %v394_v39 = vrot.slane %v366_v31, 4  ;;  %v3282_v21 = vld [vmem:[#allocation2 + $0x244] ss:$8 sps:$4 sm:$0xff]  }
 0x131   :  { %v582_v35 = vadd.f32 %v551_v25, %v533_v24  ;;  %v601_v41 = vmul.f32 0.01, %v585_v34  ;;  %vm593_vm4 = vcmp.ge.f32.partialorder %v585_v34, 0.0  ;;  %v395_v46 = vadd.f32 %v394_v39, %v366_v31 }
 0x132   :  { %1438 = vmatpush1.bf16.msra.mxu0 %v3232_v40  ;;  %v3267_v40 = vld [vmem:[#allocation2 + $0x1f4] ss:$8 sps:$4 sm:$0xff]  }
 0x133   :  { %1439 = vmatprep.subr.bf16.mxu0 %v3237_v44  ;;  %v598_v8 = vmul.f32 0.01, %v582_v35  ;;  %vm590_vm5 = vcmp.ge.f32.partialorder %v582_v35, 0.0  ;;  %v413_v44 = vadd.f32 %v412_v5, %v369_v28  ;;  %v396_v55 = vrot.slane %v395_v46, 2  ;;  %v3283_v28 = vld [vmem:[#allocation2 + $0x250] ss:$8 sps:$4 sm:$0xff]  }
 0x134   :  { %v3289_v5 = vld [vmem:[#allocation2 + $0x270] ss:$8 sps:$4 sm:$0xff]  }
 0x136   :  { %1440 = vmatpush1.bf16.msra.mxu0 %v3235_v45  ;;  %v340_v45 = vrot.slane %v339_v38, 2 }
 0x137   :  { %1441 = vmatprep.subr.bf16.mxu0 %v3240_v48  ;;  %v609_v48 = vsel %vm593_vm4, %v585_v34, %v601_v41  ;;  %v3286_v34 = vld [vmem:[#allocation2 + $0x260] ss:$8 sps:$4 sm:$0xff]  }
 0x138   :  { %v617_v51 = vpack.c.bf16 %v609_v48, %v609_v48  ;;  %v341_v54 = vadd.f32 %v340_v45, %v339_v38  ;;  %v3292_v41 = vld [vmem:[#allocation2 + $0x280] ss:$8 sps:$4 sm:$0xff]   ;;  %v3303_v45 = vld [vmem:[#allocation2 + $0x2b4] ss:$8 sps:$4 sm:$0xff]  }
 0x13a   :  { %1442 = vmatpush1.bf16.msra.mxu0 %v3238_v49  ;;  %v606_v49 = vsel %vm590_vm5, %v582_v35, %v598_v8  ;;  %v3297_v8 = vld [vmem:[#allocation2 + $0x294] ss:$8 sps:$4 sm:$0xff]  }
 0x13b   :  { %1443 = vmatprep.subr.bf16.mxu0 %v3243_v52  ;;  %v359_v52 = vadd.f32 %v358_v43, %v357_v37  ;;  %v3291_v37 = vld [vmem:[#allocation2 + $0x274] ss:$8 sps:$4 sm:$0xff]   ;;  %v3300_v43 = vld [vmem:[#allocation2 + $0x2a4] ss:$8 sps:$4 sm:$0xff]  }
 0x13e   :  { %1444 = vmatpush1.bf16.msra.mxu0 %v3241_v53  ;;  %v414_v53 = vrot.slane %v413_v44, 2 }
 0x13f   :  { %1445 = vmatprep.subr.bf16.mxu0 %v3246_v56  ;;  %v614_v56 = vpack.c.bf16 %v606_v49, %v606_v49 }
 0x142   :  { %1446 = vmatpush1.bf16.msra.mxu0 %v3244_v57  ;;  %v3273_v57 = vld [vmem:[#allocation2 + $0x214] ss:$8 sps:$4 sm:$0xff]  }
 0x143   :  { %1447 = vmatprep.subr.bf16.mxu0 %v3249_v58  ;;  %v3271_v58 = vld [vmem:[#allocation2 + $0x210] ss:$8 sps:$4 sm:$0xff]  }
 0x146   :  { %1448 = vmatpush1.bf16.msra.mxu0 %v3247_v59  ;;  %v360_v59 = vrot.slane %v359_v52, 1 }
 0x147   :  { %1449 = vmatprep.subr.bf16.mxu0 %v3252_v60  ;;  %v415_v60 = vadd.f32 %v414_v53, %v413_v44  ;;  %v3298_v44 = vld [vmem:[#allocation2 + $0x2a0] ss:$8 sps:$4 sm:$0xff]  }
 0x148   :  { %v361_v2 = vadd.f32 %v360_v59, %v359_v52  ;;  %v3301_v52 = vld [vmem:[#allocation2 + $0x2b0] ss:$8 sps:$4 sm:$0xff]   ;;  %v3309_v59 = vld [vmem:[#allocation2 + $0x2d4] ss:$8 sps:$4 sm:$0xff]  }
 0x149   :  { %v416_v3 = vrot.slane %v415_v60, 1 }
 0x14a   :  { %1450 = vmatpush1.bf16.msra.mxu0 %v3250_v61  ;;  %v342_v61 = vrot.slane %v341_v54, 1  ;;  %v425_v14 = vmul.f32 0.125, %v361_v2  ;;  %v3312_v2 = vld [vmem:[#allocation2 + $0x2e4] ss:$8 sps:$4 sm:$0xff]  }
 0x14b   :  { %1451 = vmatprep.subr.bf16.mxu0 %v3255_v62  ;;  %v397_v62 = vadd.f32 %v396_v55, %v395_v46  ;;  %v417_v11 = vadd.f32 %v416_v3, %v415_v60  ;;  %v3306_v55 = vld [vmem:[#allocation2 + $0x2c4] ss:$8 sps:$4 sm:$0xff]  }
 0x14c   :  { %v343_v7 = vadd.f32 %v342_v61, %v341_v54  ;;  %v441_v24 = vmul.f32 %v425_v14, %v425_v14  ;;  %v465_v46 = vsub.f32 %v3742_v19, %v425_v14  ;;  %v3304_v19 = vld [vmem:[#allocation2 + $0x2c0] ss:$8 sps:$4 sm:$0xff]  }
 0x14d   :  { %v433_v23 = vmul.f32 0.125, %v417_v11  ;;  %v3315_v11 = vld [vmem:[#allocation2 + $0x2f4] ss:$8 sps:$4 sm:$0xff]  }
 0x14e   :  { %1452 = vmatpush1.bf16.msra.mxu0 %v3253_v32  ;;  %v398_v32 = vrot.slane %v397_v62, 1 }
 0x14f   :  { %1453 = vmatprep.subr.bf16.mxu0 %v3258_v9  ;;  %v3279_v9 = vld [vmem:[#allocation2 + $0x234] ss:$8 sps:$4 sm:$0xff]   ;;  %v449_v30 = vsub.f32 %v433_v23, %v441_v24  ;;  %v3318_v23 = vld [vmem:[#allocation2 + $0x304] ss:$8 sps:$4 sm:$0xff]  }
 0x150   :  { %v399_v18 = vadd.f32 %v398_v32, %v397_v62  ;;  %v3307_v62 = vld [vmem:[#allocation2 + $0x2d0] ss:$8 sps:$4 sm:$0xff]   ;;  %v3310_v32 = vld [vmem:[#allocation2 + $0x2e0] ss:$8 sps:$4 sm:$0xff]  }
 0x151   :  { %v457_v35 = vmax.f32 %v449_v30, 0.0 }
 0x152   :  { %1454 = vmatpush1.bf16.msra.mxu0 %v3256_v20  ;;  %v422_v20 = vmul.f32 0.125, %v343_v7  ;;  %v430_v25 = vmul.f32 0.125, %v399_v18 }
 0x153   :  { %1455 = vmatprep.subr.bf16.mxu0 %v3261_v29  ;;  %v3280_v29 = vld [vmem:[#allocation2 + $0x240] ss:$8 sps:$4 sm:$0xff]   ;;  %v473_v38 = vadd.f32 1e-05, %v457_v35 }
 0x154   :  { %v462_v49 = vsub.f32 %v3714_v15, %v422_v20 }
 0x155   :  { %3506 = vrsqrt.f32 %v473_v38 }
 0x156   :  { %1456 = vmatpush1.bf16.msra.mxu0 %v3259_v26  ;;  %v438_v26 = vmul.f32 %v422_v20, %v422_v20  ;;  %v3313_v20 = vld [vmem:[#allocation2 + $0x2f0] ss:$8 sps:$4 sm:$0xff]  }
 0x157   :  { %1457 = vmatprep.subr.bf16.mxu0 %v3264_v33  ;;  %v3288_v33 = vld [vmem:[#allocation2 + $0x264] ss:$8 sps:$4 sm:$0xff]  }
 0x158   :  { %v446_v31 = vsub.f32 %v430_v25, %v438_v26  ;;  %v3316_v26 = vld [vmem:[#allocation2 + $0x300] ss:$8 sps:$4 sm:$0xff]  }
 0x15a   :  { %1458 = vmatpush1.bf16.msra.mxu0 %v3262_v36  ;;  %v454_v36 = vmax.f32 %v446_v31, 0.0 }
 0x15b   :  { %1459 = vmatprep.subr.bf16.mxu0 %v3267_v40  ;;  %v3294_v40 = vld [vmem:[#allocation2 + $0x284] ss:$8 sps:$4 sm:$0xff]  }
 0x15c   :  { %v470_v39 = vadd.f32 1e-05, %v454_v36 }
 0x15e   :  { %1460 = vmatpush1.bf16.msra.mxu0 %v3265_v42  ;;  %3508 = vrsqrt.f32 %v470_v39  ;;  %v3295_v42 = vld [vmem:[#allocation2 + $0x290] ss:$8 sps:$4 sm:$0xff]  }
 0x15f   :  { %1470 = vmatprep.subr.bf16.mxu0 %v3270_v47  ;;  %v521_v47 = vsub.s32 7, %v3727_v6  ;;  %v3507_v48 = vpop.eup %3506 }
 0x160   :  { %v489_v53 = vmul.f32 %v3507_v48, %v465_v46  ;;  %v3331_v48 = vld [vmem:[#allocation2 + $0x350] ss:$8 sps:$4 sm:$0xff]  }
 0x161   :  { %1462 = vmatmul.mubr.bf16.vlgmr.msra.gmra.mrb[4].mxu0 %v614_v56  ;;  %v522_v54 = vrot.slane %v3735_v13, %v521_v47  ;;  %v571_v15 = vrot.slane %v3747_v22, %v521_v47  ;;  %v3333_v47 = vld [vmem:[#allocation2 + $0x354] ss:$8 sps:$4 sm:$0xff]  }
 0x162   :  { %1471 = vmatpush1.bf16.msra.mxu0 %v3268_v50  ;;  %1502 = vmatprep.mubr.bf16.mxu0 %v617_v51  ;;  %v509_v50 = vsub.s32 4, %v3727_v6 }
 0x163   :  { %1472 = vmatprep.subr.bf16.mxu0 %v3273_v57 }
 0x164   :  { %v510_v57 = vrot.slane %v3735_v13, %v509_v50  ;;  %v559_v61 = vrot.slane %v3747_v22, %v509_v50  ;;  %v3336_v50 = vld [vmem:[#allocation2 + $0x364] ss:$8 sps:$4 sm:$0xff]  }
 0x166   :  { %1473 = vmatpush1.bf16.msra.mxu0 %v3271_v58  ;;  %v538_v58 = vmul.f32 %v522_v54, %v489_v53  ;;  %v3339_v53 = vld [vmem:[#allocation2 + $0x374] ss:$8 sps:$4 sm:$0xff]   ;;  %v3337_v54 = vld [vmem:[#allocation2 + $0x370] ss:$8 sps:$4 sm:$0xff]  }
 0x167   :  { %1474 = vmatprep.subr.bf16.mxu0 %v3276_v63  ;;  %v350_v63 = vrot.slane %v3737_v16, 4 }
 0x168   :  { %v3509_v51 = vpop.eup %3508  ;;  %v587_v3 = vadd.f32 %v571_v15, %v538_v58  ;;  %v3343_v58 = vld [vmem:[#allocation2 + $0x390] ss:$8 sps:$4 sm:$0xff]   ;;  %v3346_v15 = vld [vmem:[#allocation2 + $0x3a0] ss:$8 sps:$4 sm:$0xff]  }
 0x169   :  { %v486_v56 = vmul.f32 %v3509_v51, %v462_v49  ;;  %v3334_v51 = vld [vmem:[#allocation2 + $0x360] ss:$8 sps:$4 sm:$0xff]  }
 0x16a   :  { %1475 = vmatpush1.bf16.msra.mxu0 %v3274_v1  ;;  %v368_v1 = vmul.f32 %v3737_v16, %v3737_v16  ;;  %v603_v14 = vmul.f32 0.01, %v587_v3  ;;  %vm595_vm6 = vcmp.ge.f32.partialorder %v587_v3, 0.0 }
 0x16b   :  { %1476 = vmatprep.subr.bf16.mxu0 %v3279_v9  ;;  %v535_v60 = vmul.f32 %v510_v57, %v486_v56  ;;  %v351_v9 = vadd.f32 %v350_v63, %v3737_v16  ;;  %v3342_v56 = vld [vmem:[#allocation2 + $0x384] ss:$8 sps:$4 sm:$0xff]   ;;  %v3340_v57 = vld [vmem:[#allocation2 + $0x380] ss:$8 sps:$4 sm:$0xff]  }
 0x16c   :  { %v611_v24 = vsel %vm595_vm6, %v587_v3, %v603_v14  ;;  %v3355_v14 = vld [vmem:[#allocation2 + $0x3d0] ss:$8 sps:$4 sm:$0xff]  }
 0x16d   :  { %v584_v7 = vadd.f32 %v559_v61, %v535_v60  ;;  %v3351_v60 = vld [vmem:[#allocation2 + $0x3b4] ss:$8 sps:$4 sm:$0xff]  }
 0x16e   :  { %1477 = vmatpush1.bf16.msra.mxu0 %v3277_v10  ;;  %v406_v10 = vrot.slane %v368_v1, 4 }
 0x16f   :  { %1478 = vmatprep.subr.bf16.mxu0 %v3282_v21  ;;  %v600_v18 = vmul.f32 0.01, %v584_v7  ;;  %vm592_vm7 = vcmp.ge.f32.partialorder %v584_v7, 0.0  ;;  %v352_v21 = vrot.slane %v351_v9, 2 }
 0x171   :  { %v608_v25 = vsel %vm592_vm7, %v584_v7, %v600_v18  ;;  %v3358_v18 = vld [vmem:[#allocation2 + $0x3e0] ss:$8 sps:$4 sm:$0xff]  }
 0x172   :  { %1479 = vmatpush1.bf16.msra.mxu0 %v3280_v29  ;;  %v407_v29 = vadd.f32 %v406_v10, %v368_v1  ;;  %v616_v31 = vpack.c.bf16 %v608_v25, %v608_v25  ;;  %v3349_v1 = vld [vmem:[#allocation2 + $0x3b0] ss:$8 sps:$4 sm:$0xff]   ;;  %v3366_v25 = vld [vmem:[%s4202_s3 + $0x48] sm:$0xff]  }
 0x173   :  { %1480 = vmatprep.subr.bf16.mxu0 %v3285_v27  ;;  %v619_v27 = vpack.c.bf16 %v611_v24, %v611_v24  ;;  %v3365_v24 = vld [vmem:[%s4202_s3] sm:$0xff]  }
 0x174   :  { %v408_v30 = vrot.slane %v407_v29, 2 }
 0x176   :  { %1481 = vmatpush1.bf16.msra.mxu0 %v3283_v28  ;;  %v353_v28 = vadd.f32 %v352_v21, %v351_v9  ;;  %v409_v36 = vadd.f32 %v408_v30, %v407_v29  ;;  %v3357_v9 = vld [vmem:[#allocation2 + $0x3d4] ss:$8 sps:$4 sm:$0xff]  }
 0x177   :  { %1482 = vmatprep.subr.bf16.mxu0 %v3288_v33  ;;  %v3321_v33 = vld [vmem:[#allocation2 + $0x314] ss:$8 sps:$4 sm:$0xff]  }
 0x178   :  { %v354_v35 = vrot.slane %v353_v28, 1  ;;  %v410_v39 = vrot.slane %v409_v36, 1  ;;  %v3370_v30 = vld [vmem:[%s4202_s3 + $0x58] sm:$0xff]  }
 0x17a   :  { %1483 = vmatpush1.bf16.msra.mxu0 %v3286_v34  ;;  %v3319_v34 = vld [vmem:[#allocation2 + $0x310] ss:$8 sps:$4 sm:$0xff]   ;;  %v355_v38 = vadd.f32 %v354_v35, %v353_v28  ;;  %v3374_v35 = vld [vmem:[%s4202_s3 + $0x68] sm:$0xff]  }
 0x17b   :  { %1484 = vmatprep.subr.bf16.mxu0 %v3291_v37  ;;  %v3324_v37 = vld [vmem:[#allocation2 + $0x324] ss:$8 sps:$4 sm:$0xff]   ;;  %v3369_v28 = vld [vmem:[%s4202_s3 + $0x10] sm:$0xff]  }
 0x17e   :  { %1485 = vmatpush1.bf16.msra.mxu0 %v3289_v5  ;;  %v3322_v5 = vld [vmem:[#allocation2 + $0x320] ss:$8 sps:$4 sm:$0xff]  }
 0x17f   :  { %1486 = vmatprep.subr.bf16.mxu0 %v3294_v40  ;;  %v3327_v40 = vld [vmem:[#allocation2 + $0x334] ss:$8 sps:$4 sm:$0xff]  }
 0x182   :  { %1487 = vmatpush1.bf16.msra.mxu0 %v3292_v41  ;;  %v3325_v41 = vld [vmem:[#allocation2 + $0x330] ss:$8 sps:$4 sm:$0xff]  }
 0x183   :  { %1488 = vmatprep.subr.bf16.mxu0 %v3297_v8  ;;  %v411_v8 = vadd.f32 %v410_v39, %v409_v36  ;;  %v3375_v36 = vld [vmem:[%s4202_s3 + $0x28] sm:$0xff]   ;;  %v3379_v39 = vld [vmem:[%s4202_s3 + $0x38] sm:$0xff]  }
 0x186   :  { %1489 = vmatpush1.bf16.msra.mxu0 %v3295_v42  ;;  %v424_v42 = vmul.f32 0.125, %v355_v38  ;;  %v3378_v38 = vld [vmem:[%s4202_s3 + $0x78] sm:$0xff]  }
 0x187   :  { %1490 = vmatprep.subr.bf16.mxu0 %v3300_v43  ;;  %v3330_v43 = vld [vmem:[#allocation2 + $0x344] ss:$8 sps:$4 sm:$0xff]  }
 0x188   :  { %v440_v46 = vmul.f32 %v424_v42, %v424_v42  ;;  %v464_v61 = vsub.f32 %v3737_v16, %v424_v42  ;;  %v3360_v16 = vld [vmem:[#allocation2 + $0x3e4] ss:$8 sps:$4 sm:$0xff]  }
 0x18a   :  { %1491 = vmatpush1.bf16.msra.mxu0 %v3298_v44  ;;  %v3328_v44 = vld [vmem:[#allocation2 + $0x340] ss:$8 sps:$4 sm:$0xff]  }
 0x18b   :  { %1492 = vmatprep.subr.bf16.mxu0 %v3303_v45  ;;  %v432_v45 = vmul.f32 0.125, %v411_v8 }
 0x18d   :  { %v448_v49 = vsub.f32 %v432_v45, %v440_v46 }
 0x18e   :  { %1493 = vmatpush1.bf16.msra.mxu0 %v3301_v52 }
 0x18f   :  { %1494 = vmatprep.subr.bf16.mxu0 %v3306_v55  ;;  %v456_v52 = vmax.f32 %v448_v49, 0.0 }
 0x191   :  { %v472_v55 = vadd.f32 1e-05, %v456_v52 }
 0x192   :  { %1495 = vmatpush1.bf16.msra.mxu0 %v3304_v19  ;;  %v3345_v19 = vld [vmem:[#allocation2 + $0x394] ss:$8 sps:$4 sm:$0xff]  }
 0x193   :  { %1496 = vmatprep.subr.bf16.mxu0 %v3309_v59  ;;  %3510 = vrsqrt.f32 %v472_v55  ;;  %v3348_v59 = vld [vmem:[#allocation2 + $0x3a4] ss:$8 sps:$4 sm:$0xff]  }
 0x196   :  { %1497 = vmatpush1.bf16.msra.mxu0 %v3307_v62  ;;  %v517_v62 = vsub.s32 6, %v3727_v6 }
 0x197   :  { %1498 = vmatprep.subr.bf16.mxu0 %v3312_v2  ;;  %v3354_v2 = vld [vmem:[#allocation2 + $0x3c4] ss:$8 sps:$4 sm:$0xff]  }
 0x198   :  { %v518_v7 = vrot.slane %v3735_v13, %v517_v62  ;;  %v3361_v13 = vld [vmem:[#allocation2 + $0x3f0] ss:$8 sps:$4 sm:$0xff]  }
 0x19a   :  { %1499 = vmatpush1.bf16.msra.mxu0 %v3310_v32  ;;  %v3352_v32 = vld [vmem:[#allocation2 + $0x3c0] ss:$8 sps:$4 sm:$0xff]  }
 0x19b   :  { %1500 = vmatprep.subr.bf16.mxu0 %v3315_v11  ;;  %v567_v11 = vrot.slane %v3747_v22, %v517_v62  ;;  %v3364_v22 = vld [vmem:[%s4202_s3 + $0x40] sm:$0xff]  }
 0x19c   :  { %3098 = vmatprep.subr.bf16.mxu1 %v3364_v22 }
 0x19d   :  { %v3511_v63 = vpop.eup %3510  ;;  %3099 = vmatpush3.bf16.msra.mxu1 %v3365_v24 }
 0x19e   :  { %1501 = vmatpush1.bf16.msra.mxu0 %v3313_v20  ;;  %v488_v3 = vmul.f32 %v3511_v63, %v464_v61  ;;  %v3363_v20 = vld [vmem:[#allocation2 + $0x3f4] ss:$8 sps:$4 sm:$0xff]   ;;  %3100 = vmatprep.subr.bf16.mxu1 %v3366_v25 }
 0x19f   :  { %1511 = vmatprep.subr.bf16.mxu0 %v3318_v23 }
 0x1a0   :  { %v537_v10 = vmul.f32 %v518_v7, %v488_v3 }
 0x1a1   :  { %1503 = vmatmul.mubr.bf16.vlgmr.msra.gmra.mrb[4].mxu0 %v616_v31  ;;  %v3371_v31 = vld [vmem:[%s4202_s3 + $0x18] sm:$0xff]  }
 0x1a2   :  { %1512 = vmatpush1.bf16.msra.mxu0 %v3316_v26  ;;  %1543 = vmatprep.mubr.bf16.mxu0 %v619_v27  ;;  %v586_v6 = vadd.f32 %v567_v11, %v537_v10  ;;  %v3367_v26 = vld [vmem:[%s4202_s3 + $0x8] sm:$0xff]   ;;  %v3368_v27 = vld [vmem:[%s4202_s3 + $0x50] sm:$0xff]  }
 0x1a3   :  { %1513 = vmatprep.subr.bf16.mxu0 %v3321_v33  ;;  %3101 = vmatpush3.bf16.msra.mxu1 %v3367_v26  ;;  %v3372_v33 = vld [vmem:[%s4202_s3 + $0x60] sm:$0xff]  }
 0x1a4   :  { %v602_v21 = vmul.f32 0.01, %v586_v6  ;;  %vm594_vm8 = vcmp.ge.f32.partialorder %v586_v6, 0.0  ;;  %3102 = vmatprep.subr.bf16.mxu1 %v3368_v27 }
 0x1a6   :  { %1514 = vmatpush1.bf16.msra.mxu0 %v3319_v34  ;;  %v610_v29 = vsel %vm594_vm8, %v586_v6, %v602_v21  ;;  %v3373_v34 = vld [vmem:[%s4202_s3 + $0x20] sm:$0xff]  }
 0x1a7   :  { %1515 = vmatprep.subr.bf16.mxu0 %v3324_v37  ;;  %v618_v23 = vpack.c.bf16 %v610_v29, %v610_v29  ;;  %3103 = vmatpush3.bf16.msra.mxu1 %v3369_v28  ;;  %v3376_v37 = vld [vmem:[%s4202_s3 + $0x70] sm:$0xff]  }
 0x1a8   :  { %3104 = vmatprep.subr.bf16.mxu1 %v3370_v30  ;;  %v2988_v29 = vld [vmem:[%s4206_s7 + $0x10] ss:$2 sm:$0x3] }
 0x1a9   :  { %v1604_v24 = vrot.slane %v2988_v29, %v3730_v12  ;;  %v1608_v27 = vrot.slane %v2988_v29, %v3740_v17 }
 0x1aa   :  { %1516 = vmatpush1.bf16.msra.mxu0 %v3322_v5  ;;  %v3377_v5 = vld [vmem:[%s4202_s3 + $0x30] sm:$0xff]  }
 0x1ab   :  { %1517 = vmatprep.subr.bf16.mxu0 %v3327_v40  ;;  %3105 = vmatpush3.bf16.msra.mxu1 %v3371_v31 }
 0x1ac   :  { %3106 = vmatprep.subr.bf16.mxu1 %v3372_v33 }
 0x1ae   :  { %1518 = vmatpush1.bf16.msra.mxu0 %v3325_v41 }
 0x1af   :  { %1519 = vmatprep.subr.bf16.mxu0 %v3330_v43  ;;  %3107 = vmatpush3.bf16.msra.mxu1 %v3373_v34 }
 0x1b0   :  { %3108 = vmatprep.subr.bf16.mxu1 %v3374_v35 }
 0x1b2   :  { %1520 = vmatpush1.bf16.msra.mxu0 %v3328_v44 }
 0x1b3   :  { %1521 = vmatprep.subr.bf16.mxu0 %v3333_v47  ;;  %3109 = vmatpush3.bf16.msra.mxu1 %v3375_v36 }
 0x1b4   :  { %3110 = vmatprep.subr.bf16.mxu1 %v3376_v37 }
 0x1b6   :  { %1522 = vmatpush1.bf16.msra.mxu0 %v3331_v48 }
 0x1b7   :  { %1523 = vmatprep.subr.bf16.mxu0 %v3336_v50  ;;  %3111 = vmatpush3.bf16.msra.mxu1 %v3377_v5 }
 0x1b8   :  { %3112 = vmatprep.subr.bf16.mxu1 %v3378_v38 }
 0x1ba   :  { %1524 = vmatpush1.bf16.msra.mxu0 %v3334_v51 }
 0x1bb   :  { %1525 = vmatprep.subr.bf16.mxu0 %v3339_v53  ;;  %3113 = vmatpush3.bf16.msra.mxu1 %v3379_v39 }
 0x1be   :  { %1526 = vmatpush1.bf16.msra.mxu0 %v3337_v54 }
 0x1bf   :  { %1527 = vmatprep.subr.bf16.mxu0 %v3342_v56 }
 0x1c2   :  { %1528 = vmatpush1.bf16.msra.mxu0 %v3340_v57 }
 0x1c3   :  { %1529 = vmatprep.subr.bf16.mxu0 %v3345_v19 }
 0x1c6   :  { %1530 = vmatpush1.bf16.msra.mxu0 %v3343_v58 }
 0x1c7   :  { %1531 = vmatprep.subr.bf16.mxu0 %v3348_v59 }
 0x1ca   :  { %1532 = vmatpush1.bf16.msra.mxu0 %v3346_v15 }
 0x1cb   :  { %1533 = vmatprep.subr.bf16.mxu0 %v3351_v60 }
 0x1ce   :  { %1534 = vmatpush1.bf16.msra.mxu0 %v3349_v1 }
 0x1cf   :  { %1535 = vmatprep.subr.bf16.mxu0 %v3354_v2 }
 0x1d2   :  { %1536 = vmatpush1.bf16.msra.mxu0 %v3352_v32 }
 0x1d3   :  { %1537 = vmatprep.subr.bf16.mxu0 %v3357_v9 }
 0x1d6   :  { %1538 = vmatpush1.bf16.msra.mxu0 %v3355_v14 }
 0x1d7   :  { %1539 = vmatprep.subr.bf16.mxu0 %v3360_v16 }
 0x1da   :  { %1540 = vmatpush1.bf16.msra.mxu0 %v3358_v18 }
 0x1db   :  { %1541 = vmatprep.subr.bf16.mxu0 %v3363_v20 }
 0x1de   :  { %1542 = vmatpush1.bf16.msra.mxu0 %v3361_v13 }
 0x1e1   :  { %1544 = vmatmul.mubr.bf16.vlgmr.msra.gmra.mrb[4].mxu0 %v618_v23  ;;  %v2989_v23 = vld [vmem:[%s4206_s7 + $0x11] ss:$2 sm:$0x3] }
 0x1e2   :  { %v1617_v31 = vrot.slane %v2989_v23, %v3730_v12  ;;  %v1621_v34 = vrot.slane %v2989_v23, %v3740_v17 }
 0x2b4   :  { %v1545_v40 = vpop.f32.mrb[4].mxu0 }
 0x2b5   :  { %v1556_v41 = vrot.slane %v1545_v40, 4  ;;  %v1568_v8 = vmul.f32 %v1545_v40, %v1545_v40  ;;  %v1547_v42 = vpop.f32.mrb[5].mxu0 }
 0x2b6   :  { %v1562_v43 = vrot.slane %v1547_v42, 4  ;;  %v1569_v44 = vmul.f32 %v1547_v42, %v1547_v42  ;;  %v1549_v45 = vpop.f32.mrb[6].mxu0 }
 0x2b7   :  { %v1557_v46 = vadd.f32 %v1556_v41, %v1545_v40  ;;  %v1570_v47 = vrot.slane %v1568_v8, 4  ;;  %v1550_v48 = vpop.f32.mrb[7].mxu0  ;;  %v3385_v45 = vld [vmem:[%s4203_s4 + $0x1c] ss:$12 sps:$4 sm:$0xff]  }
 0x2b8   :  { %v1563_v49 = vadd.f32 %v1562_v43, %v1547_v42  ;;  %v1576_v50 = vrot.slane %v1569_v44, 4  ;;  %v3382_v43 = vld [vmem:[%s4203_s4 + $0x4] ss:$12 sps:$4 sm:$0xff]  }
 0x2b9   :  { %v1558_v51 = vrot.slane %v1557_v46, 2  ;;  %v1571_v52 = vadd.f32 %v1570_v47, %v1568_v8  ;;  %2000 = vmatprep.subr.bf16.mxu1 %v3382_v43  ;;  %v3388_v47 = vld [vmem:[%s4203_s4 + $0x34] ss:$12 sps:$4 sm:$0xff]   ;;  %v3386_v48 = vld [vmem:[%s4203_s4 + $0x30] ss:$12 sps:$4 sm:$0xff]  }
 0x2ba   :  { %v1564_v53 = vrot.slane %v1563_v49, 2  ;;  %v1577_v54 = vadd.f32 %v1576_v50, %v1569_v44  ;;  %v3380_v44 = vld [vmem:[%s4203_s4] ss:$12 sps:$4 sm:$0xff]   ;;  %v3389_v50 = vld [vmem:[%s4203_s4 + $0x48] ss:$12 sps:$4 sm:$0xff]  }
 0x2bb   :  { %v1559_v55 = vadd.f32 %v1558_v51, %v1557_v46  ;;  %v1572_v56 = vrot.slane %v1571_v52, 2  ;;  %v3383_v46 = vld [vmem:[%s4203_s4 + $0x18] ss:$12 sps:$4 sm:$0xff]   ;;  %v3412_v43 = vld [vmem:[%s4204_s5] ss:$8 sps:$4 sm:$0xff]  }
 0x2bc   :  { %v1565_v57 = vadd.f32 %v1564_v53, %v1563_v49  ;;  %v1578_v19 = vrot.slane %v1577_v54, 2  ;;  %v3391_v49 = vld [vmem:[%s4203_s4 + $0x4c] ss:$12 sps:$4 sm:$0xff]   ;;  %v3394_v51 = vld [vmem:[%s4203_s4 + $0x64] ss:$12 sps:$4 sm:$0xff]  }
 0x2bd   :  { %v1560_v58 = vrot.slane %v1559_v55, 1  ;;  %v1573_v59 = vadd.f32 %v1572_v56, %v1571_v52  ;;  %v3392_v52 = vld [vmem:[%s4203_s4 + $0x60] ss:$12 sps:$4 sm:$0xff]   ;;  %v3397_v53 = vld [vmem:[%s4203_s4 + $0x7c] ss:$12 sps:$4 sm:$0xff]  }
 0x2be   :  { %v1566_v15 = vrot.slane %v1565_v57, 1  ;;  %v1579_v60 = vadd.f32 %v1578_v19, %v1577_v54  ;;  %v3395_v54 = vld [vmem:[%s4203_s4 + $0x78] ss:$12 sps:$4 sm:$0xff]   ;;  %v3398_v56 = vld [vmem:[%s4203_s4 + $0x90] ss:$12 sps:$4 sm:$0xff]  }
 0x2bf   :  { %v1561_v61 = vadd.f32 %v1560_v58, %v1559_v55  ;;  %v1574_v62 = vrot.slane %v1573_v59, 1  ;;  %v3400_v55 = vld [vmem:[%s4203_s4 + $0x94] ss:$12 sps:$4 sm:$0xff]   ;;  %v3584_v58 = vmov 0.0  }
 0x2c0   :  { %v1567_v63 = vadd.f32 %v1566_v15, %v1565_v57  ;;  %v1580_v1 = vrot.slane %v1579_v60, 1  ;;  %v3403_v57 = vld [vmem:[%s4203_s4 + $0xac] ss:$12 sps:$4 sm:$0xff]   ;;  %v3401_v19 = vld [vmem:[%s4203_s4 + $0xa8] ss:$12 sps:$4 sm:$0xff]  }
 0x2c1   :  { %v1575_v2 = vadd.f32 %v1574_v62, %v1573_v59  ;;  %v1582_v3 = vmul.f32 0.125, %v1561_v61 }
 0x2c2   :  { %v1581_v7 = vadd.f32 %v1580_v1, %v1579_v60  ;;  %v1583_v32 = vmul.f32 0.125, %v1567_v63 }
 0x2c3   :  { %v1584_v9 = vmul.f32 0.125, %v1575_v2  ;;  %v1586_v10 = vmul.f32 %v1582_v3, %v1582_v3  ;;  %v1592_v22 = vsub.f32 %v1545_v40, %v1582_v3 }
 0x2c4   :  { %v1585_v11 = vmul.f32 0.125, %v1581_v7  ;;  %v1587_v14 = vmul.f32 %v1583_v32, %v1583_v32  ;;  %v1593_v26 = vsub.f32 %v1547_v42, %v1583_v32 }
 0x2c5   :  { %v1588_v16 = vsub.f32 %v1584_v9, %v1586_v10 }
 0x2c6   :  { %v1589_v6 = vsub.f32 %v1585_v11, %v1587_v14 }
 0x2c7   :  { %v1590_v18 = vmax.f32 %v1588_v16, 0.0 }
 0x2c8   :  { %v1591_v20 = vmax.f32 %v1589_v6, 0.0 }
 0x2c9   :  { %v1594_v21 = vadd.f32 1e-05, %v1590_v18 }
 0x2ca   :  { %v1595_v13 = vadd.f32 1e-05, %v1591_v20 }
 0x2cb   :  { %3512 = vrsqrt.f32 %v1594_v21 }
 0x2cc   :  { %3514 = vrsqrt.f32 %v1595_v13 }
 0x2d5   :  { %v3513_v25 = vpop.eup %3512 }
 0x2d6   :  { %v3515_v28 = vpop.eup %3514  ;;  %v1598_v30 = vmul.f32 %v3513_v25, %v1592_v22 }
 0x2d7   :  { %v1599_v33 = vmul.f32 %v3515_v28, %v1593_v26  ;;  %v3006_v26 = vld [vmem:[%s4206_s7 + $0x14] ss:$0 sm:$0xff]  ;;  %v3007_v28 = vld [vmem:[%s4206_s7 + $0x15] ss:$0 sm:$0xff] }
 0x2d8   :  { %v1611_v35 = vmul.f32 %v1604_v24, %v1598_v30 }
 0x2d9   :  { %v1612_v36 = vmul.f32 %v1608_v27, %v1599_v33 }
 0x2da   :  { %v1624_v37 = vadd.f32 %v1617_v31, %v1611_v35  ;;  %v3404_v35 = vld [vmem:[%s4203_s4 + $0x8] ss:$12 sps:$4 sm:$0xff]  }
 0x2db   :  { %v1625_v5 = vadd.f32 %v1621_v34, %v1612_v36 }
 0x2dc   :  { %vm1626_vm9 = vcmp.ge.f32.partialorder %v1624_v37, 0.0  ;;  %v1628_v38 = vmul.f32 0.01, %v1624_v37 }
 0x2dd   :  { %vm1627_vm10 = vcmp.ge.f32.partialorder %v1625_v5, 0.0  ;;  %v1629_v39 = vmul.f32 0.01, %v1625_v5 }
 0x2de   :  { %v1630_v40 = vsel %vm1626_vm9, %v1624_v37, %v1628_v38  ;;  %v3405_v37 = vld [vmem:[%s4203_s4 + $0x20] ss:$12 sps:$4 sm:$0xff]   ;;  %v3407_v38 = vld [vmem:[%s4203_s4 + $0x50] ss:$12 sps:$4 sm:$0xff]  }
 0x2df   :  { %v1631_v41 = vsel %vm1627_vm10, %v1625_v5, %v1629_v39  ;;  %v1632_v42 = vpack.c.bf16 %v1630_v40, %v1630_v40  ;;  %v3406_v5 = vld [vmem:[%s4203_s4 + $0x38] ss:$12 sps:$4 sm:$0xff]   ;;  %v3408_v39 = vld [vmem:[%s4203_s4 + $0x68] ss:$12 sps:$4 sm:$0xff]   ;;  %v3409_v40 = vld [vmem:[%s4203_s4 + $0x80] ss:$12 sps:$4 sm:$0xff]  }
 0x2e0   :  { %v1633_v8 = vpack.c.bf16 %v1631_v41, %v1631_v41  ;;  %v3410_v41 = vld [vmem:[%s4203_s4 + $0x98] ss:$12 sps:$4 sm:$0xff]  }
 0x2e2   :  { %1794 = vmatprep.mubr.bf16.mxu1 %v1633_v8  ;;  %v3411_v8 = vld [vmem:[%s4203_s4 + $0xb0] ss:$12 sps:$4 sm:$0xff]  }
 0x2e3   :  { %1795 = vmatmul.mubr.bf16.vlgmr.msra.gmra.mrb[12].mxu1 %v1632_v42  ;;  %v3414_v42 = vld [vmem:[%s4204_s5 + $0x4] ss:$8 sps:$4 sm:$0xff]  }
 0x2e4   :  { %2032 = vmatprep.mubr.bf16.mxu1 %v3583_v0  ;;  %2001 = vmatpush1.bf16.msra.mxu1 %v3380_v44  ;;  %v3417_v44 = vld [vmem:[%s4204_s5 + $0x14] ss:$8 sps:$4 sm:$0xff]  }
 0x2e5   :  { %2002 = vmatprep.subr.bf16.mxu1 %v3385_v45  ;;  %v3415_v45 = vld [vmem:[%s4204_s5 + $0x10] ss:$8 sps:$4 sm:$0xff]  }
 0x2e8   :  { %2003 = vmatpush1.bf16.msra.mxu1 %v3383_v46  ;;  %v3420_v46 = vld [vmem:[%s4204_s5 + $0x24] ss:$8 sps:$4 sm:$0xff]  }
 0x2e9   :  { %2004 = vmatprep.subr.bf16.mxu1 %v3388_v47  ;;  %v3418_v47 = vld [vmem:[%s4204_s5 + $0x20] ss:$8 sps:$4 sm:$0xff]  }
 0x2ec   :  { %2005 = vmatpush1.bf16.msra.mxu1 %v3386_v48  ;;  %v3423_v48 = vld [vmem:[%s4204_s5 + $0x34] ss:$8 sps:$4 sm:$0xff]  }
 0x2ed   :  { %2006 = vmatprep.subr.bf16.mxu1 %v3391_v49  ;;  %v3421_v49 = vld [vmem:[%s4204_s5 + $0x30] ss:$8 sps:$4 sm:$0xff]  }
 0x2f0   :  { %2007 = vmatpush1.bf16.msra.mxu1 %v3389_v50  ;;  %v3426_v50 = vld [vmem:[%s4204_s5 + $0x44] ss:$8 sps:$4 sm:$0xff]  }
 0x2f1   :  { %2008 = vmatprep.subr.bf16.mxu1 %v3394_v51  ;;  %v3424_v51 = vld [vmem:[%s4204_s5 + $0x40] ss:$8 sps:$4 sm:$0xff]  }
 0x2f4   :  { %2009 = vmatpush1.bf16.msra.mxu1 %v3392_v52  ;;  %v3429_v52 = vld [vmem:[%s4204_s5 + $0x54] ss:$8 sps:$4 sm:$0xff]  }
 0x2f5   :  { %2010 = vmatprep.subr.bf16.mxu1 %v3397_v53  ;;  %v3427_v53 = vld [vmem:[%s4204_s5 + $0x50] ss:$8 sps:$4 sm:$0xff]  }
 0x2f8   :  { %2011 = vmatpush1.bf16.msra.mxu1 %v3395_v54  ;;  %v3432_v54 = vld [vmem:[%s4204_s5 + $0x64] ss:$8 sps:$4 sm:$0xff]  }
 0x2f9   :  { %2012 = vmatprep.subr.bf16.mxu1 %v3400_v55  ;;  %v3430_v55 = vld [vmem:[%s4204_s5 + $0x60] ss:$8 sps:$4 sm:$0xff]  }
 0x2fc   :  { %2013 = vmatpush1.bf16.msra.mxu1 %v3398_v56  ;;  %v3435_v56 = vld [vmem:[%s4204_s5 + $0x74] ss:$8 sps:$4 sm:$0xff]  }
 0x2fd   :  { %2014 = vmatprep.subr.bf16.mxu1 %v3403_v57  ;;  %v3433_v57 = vld [vmem:[%s4204_s5 + $0x70] ss:$8 sps:$4 sm:$0xff]  }
 0x300   :  { %2015 = vmatpush1.bf16.msra.mxu1 %v3401_v19  ;;  %v3438_v19 = vld [vmem:[%s4204_s5 + $0x84] ss:$8 sps:$4 sm:$0xff]  }
 0x301   :  { %3129 = vmatprep.subr.bf16.mxu1 %v3584_v58 }
 0x3b6   :  { %v3114_v59 = vpop.f32.mrb[12].mxu1 }
 0x3b7   :  { %v3115_v15 = vpop.f32.mrb[13].mxu1 }
 0x3b8   :  { %v3116_v60 = vadd.f32 %v3115_v15, %v3114_v59  ;;  %v3117_v61 = vpop.f32.mrb[14].mxu1  ;;  %v3441_v59 = vld [vmem:[%s4204_s5 + $0x94] ss:$8 sps:$4 sm:$0xff]   ;;  %v3439_v15 = vld [vmem:[%s4204_s5 + $0x90] ss:$8 sps:$4 sm:$0xff]  }
 0x3b9   :  { %v3118_v62 = vpop.f32.mrb[15].mxu1  ;;  %v3442_v61 = vld [vmem:[%s4204_s5 + $0xa0] ss:$8 sps:$4 sm:$0xff]  }
 0x3ba   :  { %v1804_v63 = vrot.slane %v3116_v60, 4  ;;  %v1810_v1 = vmul.f32 %v3116_v60, %v3116_v60  ;;  %v3447_v62 = vld [vmem:[%s4204_s5 + $0xb4] ss:$8 sps:$4 sm:$0xff]  }
 0x3bc   :  { %v1805_v2 = vadd.f32 %v3116_v60, %v1804_v63  ;;  %v1811_v3 = vrot.slane %v1810_v1, 4  ;;  %v3445_v63 = vld [vmem:[%s4204_s5 + $0xb0] ss:$8 sps:$4 sm:$0xff]  }
 0x3be   :  { %v1806_v7 = vrot.slane %v1805_v2, 2  ;;  %v1812_v32 = vadd.f32 %v1811_v3, %v1810_v1  ;;  %v3450_v1 = vld [vmem:[%s4204_s5 + $0xc4] ss:$8 sps:$4 sm:$0xff]   ;;  %v3453_v3 = vld [vmem:[%s4204_s5 + $0xd4] ss:$8 sps:$4 sm:$0xff]  }
 0x3c0   :  { %v1807_v9 = vadd.f32 %v1806_v7, %v1805_v2  ;;  %v1813_v10 = vrot.slane %v1812_v32, 2  ;;  %v3448_v2 = vld [vmem:[%s4204_s5 + $0xc0] ss:$8 sps:$4 sm:$0xff]   ;;  %v3451_v7 = vld [vmem:[%s4204_s5 + $0xd0] ss:$8 sps:$4 sm:$0xff]  }
 0x3c2   :  { %v1808_v11 = vrot.slane %v1807_v9, 1  ;;  %v1814_v14 = vadd.f32 %v1813_v10, %v1812_v32  ;;  %v3456_v32 = vld [vmem:[%s4204_s5 + $0xe4] ss:$8 sps:$4 sm:$0xff]   ;;  %v3459_v10 = vld [vmem:[%s4204_s5 + $0xf4] ss:$8 sps:$4 sm:$0xff]  }
 0x3c4   :  { %v1809_v16 = vadd.f32 %v1808_v11, %v1807_v9  ;;  %v1815_v6 = vrot.slane %v1814_v14, 1  ;;  %v3454_v9 = vld [vmem:[%s4204_s5 + $0xe0] ss:$8 sps:$4 sm:$0xff]   ;;  %v3457_v11 = vld [vmem:[%s4204_s5 + $0xf0] ss:$8 sps:$4 sm:$0xff]  }
 0x3c6   :  { %v1816_v18 = vadd.f32 %v1815_v6, %v1814_v14  ;;  %v1817_v20 = vmul.f32 0.125, %v1809_v16  ;;  %v3462_v14 = vld [vmem:[%s4204_s5 + $0x104] ss:$8 sps:$4 sm:$0xff]  }
 0x3c8   :  { %v1818_v21 = vmul.f32 0.125, %v1816_v18  ;;  %v1819_v13 = vmul.f32 %v1817_v20, %v1817_v20  ;;  %v1822_v24 = vsub.f32 %v3116_v60, %v1817_v20  ;;  %v3444_v60 = vld [vmem:[%s4204_s5 + $0xa4] ss:$8 sps:$4 sm:$0xff]  }
 0x3ca   :  { %v1820_v29 = vsub.f32 %v1818_v21, %v1819_v13 }
 0x3cc   :  { %v1821_v23 = vmax.f32 %v1820_v29, 0.0 }
 0x3ce   :  { %v1823_v22 = vadd.f32 1e-05, %v1821_v23 }
 0x3d0   :  { %3516 = vrsqrt.f32 %v1823_v22 }
 0x3da   :  { %v3517_v25 = vpop.eup %3516 }
 0x3db   :  { %v1825_v27 = vmul.f32 %v3517_v25, %v1822_v24 }
 0x3dd   :  { %v1830_v30 = vmul.f32 %v3006_v26, %v1825_v27 }
 0x3df   :  { %v1835_v31 = vadd.f32 %v3007_v28, %v1830_v30 }
 0x3e1   :  { %vm1836_vm11 = vcmp.ge.f32.partialorder %v1835_v31, 0.0  ;;  %v1837_v33 = vmul.f32 0.01, %v1835_v31 }
 0x3e3   :  { %v1838_v34 = vsel %vm1836_vm11, %v1835_v31, %v1837_v33 }
 0x3e4   :  { %v1839_v36 = vpack.c.bf16 %v1838_v34, %v1838_v34 }
 0x3e6   :  { %2033 = vmatmul.mubr.bf16.vlgmr.msra.gmra.mrb[16].mxu1 %v1839_v36 }
 0x3e7   :  { %3130 = vmatpush3.bf16.msra.mxu1 %v3404_v35  ;;  %3145 = vmatprep.mubr.msk.bf16.mxu1 %vm3585_vm12, %v3584_v58 }
 0x3e8   :  { %3131 = vmatprep.subr.bf16.mxu1 %v3584_v58 }
 0x3eb   :  { %3132 = vmatpush3.bf16.msra.mxu1 %v3405_v37 }
 0x3ec   :  { %3133 = vmatprep.subr.bf16.mxu1 %v3584_v58 }
 0x3ef   :  { %3134 = vmatpush3.bf16.msra.mxu1 %v3406_v5 }
 0x3f0   :  { %3135 = vmatprep.subr.bf16.mxu1 %v3584_v58 }
 0x3f3   :  { %3136 = vmatpush3.bf16.msra.mxu1 %v3407_v38 }
 0x3f4   :  { %3137 = vmatprep.subr.bf16.mxu1 %v3584_v58 }
 0x3f7   :  { %3138 = vmatpush3.bf16.msra.mxu1 %v3408_v39 }
 0x3f8   :  { %3139 = vmatprep.subr.bf16.mxu1 %v3584_v58 }
 0x3fb   :  { %3140 = vmatpush3.bf16.msra.mxu1 %v3409_v40 }
 0x3fc   :  { %3141 = vmatprep.subr.bf16.mxu1 %v3584_v58 }
 0x3ff   :  { %3142 = vmatpush3.bf16.msra.mxu1 %v3410_v41 }
 0x400   :  { %3143 = vmatprep.subr.bf16.mxu1 %v3584_v58  ;;  %v3436_v58 = vld [vmem:[%s4204_s5 + $0x80] ss:$8 sps:$4 sm:$0xff]  }
 0x403   :  { %3144 = vmatpush3.bf16.msra.mxu1 %v3411_v8 }
 0x404   :  { %2489 = vmatprep.subr.bf16.mxu1 %v3414_v42 }
 0x406   :  { %3146 = vmatmul.mubr.bf16.vlgmr.msra.gmra.mrb[20].mxu1 %v1839_v36 }
 0x407   :  { %2490 = vmatpush1.bf16.msra.mxu1 %v3412_v43 }
 0x408   :  { %2491 = vmatprep.subr.bf16.mxu1 %v3417_v44 }
 0x40b   :  { %2492 = vmatpush1.bf16.msra.mxu1 %v3415_v45 }
 0x40c   :  { %2493 = vmatprep.subr.bf16.mxu1 %v3420_v46 }
 0x40f   :  { %2494 = vmatpush1.bf16.msra.mxu1 %v3418_v47 }
 0x410   :  { %2495 = vmatprep.subr.bf16.mxu1 %v3423_v48 }
 0x413   :  { %2496 = vmatpush1.bf16.msra.mxu1 %v3421_v49 }
 0x414   :  { %2497 = vmatprep.subr.bf16.mxu1 %v3426_v50 }
 0x417   :  { %2498 = vmatpush1.bf16.msra.mxu1 %v3424_v51 }
 0x418   :  { %2499 = vmatprep.subr.bf16.mxu1 %v3429_v52 }
 0x41b   :  { %2500 = vmatpush1.bf16.msra.mxu1 %v3427_v53 }
 0x41c   :  { %2501 = vmatprep.subr.bf16.mxu1 %v3432_v54 }
 0x41f   :  { %2502 = vmatpush1.bf16.msra.mxu1 %v3430_v55 }
 0x420   :  { %2503 = vmatprep.subr.bf16.mxu1 %v3435_v56 }
 0x423   :  { %2504 = vmatpush1.bf16.msra.mxu1 %v3433_v57  ;;  %v4046_v57 = vld [vmem:[%s4206_s7 + $0x16] ss:$2 sm:$0x7] }
 0x424   :  { %2505 = vmatprep.subr.bf16.mxu1 %v3438_v19  ;;  %v4051_v19 = vld [vmem:[%s4206_s7 + $0x17] ss:$2 sm:$0x7] }
 0x427   :  { %2506 = vmatpush1.bf16.msra.mxu1 %v3436_v58 }
 0x428   :  { %2507 = vmatprep.subr.bf16.mxu1 %v3441_v59  ;;  %v2155_v59 = vrot.slane %v4046_v57, %v3730_v12 }
 0x42b   :  { %2508 = vmatpush1.bf16.msra.mxu1 %v3439_v15 }
 0x42c   :  { %2509 = vmatprep.subr.bf16.mxu1 %v3444_v60 }
 0x42f   :  { %2510 = vmatpush1.bf16.msra.mxu1 %v3442_v61 }
 0x430   :  { %2511 = vmatprep.subr.bf16.mxu1 %v3447_v62  ;;  %v2159_v62 = vrot.slane %v4046_v57, %v3740_v17 }
 0x433   :  { %2512 = vmatpush1.bf16.msra.mxu1 %v3445_v63 }
 0x434   :  { %2513 = vmatprep.subr.bf16.mxu1 %v3450_v1 }
 0x437   :  { %2514 = vmatpush1.bf16.msra.mxu1 %v3448_v2 }
 0x438   :  { %2515 = vmatprep.subr.bf16.mxu1 %v3453_v3 }
 0x43b   :  { %2516 = vmatpush1.bf16.msra.mxu1 %v3451_v7 }
 0x43c   :  { %2517 = vmatprep.subr.bf16.mxu1 %v3456_v32  ;;  %v2174_v32 = vrot.slane %v4051_v19, %v3730_v12 }
 0x43f   :  { %2518 = vmatpush1.bf16.msra.mxu1 %v3454_v9 }
 0x440   :  { %2519 = vmatprep.subr.bf16.mxu1 %v3459_v10 }
 0x443   :  { %2520 = vmatpush1.bf16.msra.mxu1 %v3457_v11 }
 0x444   :  { %2530 = vmatprep.subr.bf16.mxu1 %v3462_v14 }
 0x4b9   :  { %v2034_v16 = vpop.f32.mrb[16].mxu1 }
 0x4ba   :  { %v2085_v6 = vrot.slane %v2034_v16, 4  ;;  %v2103_v18 = vmul.f32 %v2034_v16, %v2034_v16  ;;  %v2036_v20 = vpop.f32.mrb[17].mxu1 }
 0x4bb   :  { %v2091_v21 = vrot.slane %v2036_v20, 4  ;;  %v2104_v13 = vmul.f32 %v2036_v20, %v2036_v20  ;;  %v2038_v29 = vpop.f32.mrb[18].mxu1 }
 0x4bc   :  { %v2086_v23 = vadd.f32 %v2085_v6, %v2034_v16  ;;  %v2106_v22 = vrot.slane %v2103_v18, 4  ;;  %v2039_v24 = vpop.f32.mrb[19].mxu1  ;;  %v2178_v6 = vrot.slane %v4051_v19, %v3740_v17 }
 0x4bd   :  { %v2092_v25 = vadd.f32 %v2091_v21, %v2036_v20  ;;  %v2112_v26 = vrot.slane %v2104_v13, 4 }
 0x4be   :  { %v2087_v27 = vrot.slane %v2086_v23, 2  ;;  %v2107_v28 = vadd.f32 %v2106_v22, %v2103_v18 }
 0x4bf   :  { %v2093_v30 = vrot.slane %v2092_v25, 2  ;;  %v2113_v31 = vadd.f32 %v2112_v26, %v2104_v13 }
 0x4c0   :  { %v2088_v33 = vadd.f32 %v2087_v27, %v2086_v23  ;;  %v2108_v34 = vrot.slane %v2107_v28, 2 }
 0x4c1   :  { %v2094_v35 = vadd.f32 %v2093_v30, %v2092_v25  ;;  %v2114_v36 = vrot.slane %v2113_v31, 2 }
 0x4c2   :  { %v2089_v37 = vrot.slane %v2088_v33, 1  ;;  %v2109_v5 = vadd.f32 %v2108_v34, %v2107_v28 }
 0x4c3   :  { %v2095_v38 = vrot.slane %v2094_v35, 1  ;;  %v2115_v39 = vadd.f32 %v2114_v36, %v2113_v31  ;;  %v3460_v36 = vld [vmem:[%s4204_s5 + $0x100] ss:$8 sps:$4 sm:$0xff]  }
 0x4c4   :  { %v2090_v40 = vadd.f32 %v2089_v37, %v2088_v33  ;;  %v2110_v41 = vrot.slane %v2109_v5, 1 }
 0x4c5   :  { %v2096_v8 = vadd.f32 %v2095_v38, %v2094_v35  ;;  %v2116_v42 = vrot.slane %v2115_v39, 1 }
 0x4c6   :  { %v2111_v43 = vadd.f32 %v2110_v41, %v2109_v5  ;;  %v2124_v44 = vmul.f32 0.125, %v2090_v40 }
 0x4c7   :  { %v2117_v45 = vadd.f32 %v2116_v42, %v2115_v39  ;;  %v2125_v46 = vmul.f32 0.125, %v2096_v8  ;;  %v3465_v39 = vld [vmem:[%s4204_s5 + $0x114] ss:$8 sps:$4 sm:$0xff]   ;;  %v3463_v8 = vld [vmem:[%s4204_s5 + $0x110] ss:$8 sps:$4 sm:$0xff]  }
 0x4c8   :  { %v2127_v47 = vmul.f32 0.125, %v2111_v43  ;;  %v2130_v48 = vmul.f32 %v2124_v44, %v2124_v44  ;;  %v2139_v58 = vsub.f32 %v2034_v16, %v2124_v44  ;;  %v3468_v43 = vld [vmem:[%s4204_s5 + $0x124] ss:$8 sps:$4 sm:$0xff]  }
 0x4c9   :  { %v2128_v49 = vmul.f32 0.125, %v2117_v45  ;;  %v2131_v50 = vmul.f32 %v2125_v46, %v2125_v46  ;;  %v2140_v61 = vsub.f32 %v2036_v20, %v2125_v46  ;;  %v3466_v45 = vld [vmem:[%s4204_s5 + $0x120] ss:$8 sps:$4 sm:$0xff]  }
 0x4ca   :  { %v2133_v51 = vsub.f32 %v2127_v47, %v2130_v48  ;;  %v3471_v47 = vld [vmem:[%s4204_s5 + $0x134] ss:$8 sps:$4 sm:$0xff]   ;;  %v3469_v48 = vld [vmem:[%s4204_s5 + $0x130] ss:$8 sps:$4 sm:$0xff]  }
 0x4cb   :  { %v2134_v52 = vsub.f32 %v2128_v49, %v2131_v50  ;;  %v3474_v49 = vld [vmem:[%s4204_s5 + $0x144] ss:$8 sps:$4 sm:$0xff]   ;;  %v3472_v50 = vld [vmem:[%s4204_s5 + $0x140] ss:$8 sps:$4 sm:$0xff]  }
 0x4cc   :  { %v2136_v53 = vmax.f32 %v2133_v51, 0.0  ;;  %v3477_v51 = vld [vmem:[%s4204_s5 + $0x154] ss:$8 sps:$4 sm:$0xff]  }
 0x4cd   :  { %v2137_v54 = vmax.f32 %v2134_v52, 0.0 }
 0x4ce   :  { %v2142_v55 = vadd.f32 1e-05, %v2136_v53  ;;  %v2163_v53 = vrot.slane %v4046_v57, %v3775_v4  ;;  %v3478_v57 = vld [vmem:[%s4204_s5 + $0x160] ss:$8 sps:$4 sm:$0xff]  }
 0x4cf   :  { %v2143_v56 = vadd.f32 1e-05, %v2137_v54  ;;  %v3475_v54 = vld [vmem:[%s4204_s5 + $0x150] ss:$8 sps:$4 sm:$0xff]  }
 0x4d0   :  { %3518 = vrsqrt.f32 %v2142_v55 }
 0x4d1   :  { %3520 = vrsqrt.f32 %v2143_v56  ;;  %v3480_v56 = vld [vmem:[%s4204_s5 + $0x164] ss:$8 sps:$4 sm:$0xff]  }
 0x4d9   :  { %v4055_v15 = vpop.f32.mrb[20].mxu1 }
 0x4da   :  { %v3519_v60 = vpop.eup %3518  ;;  %v2097_v63 = vrot.slane %v4055_v15, 4  ;;  %v2105_v1 = vmul.f32 %v4055_v15, %v4055_v15  ;;  %v3147_v2 = vpop.f32.mrb[21].mxu1 }
 0x4db   :  { %v3521_v3 = vpop.eup %3520  ;;  %v2148_v7 = vmul.f32 %v3519_v60, %v2139_v58  ;;  %v2078_v9 = vpop.f32.mrb[22].mxu1  ;;  %v3485_v2 = vld [vmem:[%s4205_s6 + $0x8] sm:$0xff]  }
 0x4dc   :  { %v2149_v10 = vmul.f32 %v3521_v3, %v2140_v61  ;;  %v2098_v11 = vadd.f32 %v2097_v63, %v4055_v15  ;;  %v2118_v14 = vrot.slane %v2105_v1, 4  ;;  %v3148_v16 = vpop.f32.mrb[23].mxu1  ;;  %v3486_v3 = vld [vmem:[%s4205_s6 + $0x10] sm:$0xff]   ;;  %v3489_v9 = vld [vmem:[%s4205_s6 + $0x28] sm:$0xff]  }
 0x4dd   :  { %v2167_v18 = vmul.f32 %v2155_v59, %v2148_v7  ;;  %v2182_v59 = vrot.slane %v4051_v19, %v3775_v4  ;;  %v3487_v7 = vld [vmem:[%s4205_s6 + $0x18] sm:$0xff]   ;;  %v3493_v16 = vld [vmem:[%s4205_s6 + $0x48] sm:$0xff]  }
 0x4de   :  { %v2168_v20 = vmul.f32 %v2159_v62, %v2149_v10  ;;  %v2099_v21 = vrot.slane %v2098_v11, 2  ;;  %v2119_v13 = vadd.f32 %v2118_v14, %v2105_v1  ;;  %v3481_v62 = vld [vmem:[%s4204_s5 + $0x170] ss:$8 sps:$4 sm:$0xff]   ;;  %v3484_v1 = vld [vmem:[%s4205_s6] sm:$0xff]  }
 0x4df   :  { %v2186_v29 = vadd.f32 %v2174_v32, %v2167_v18  ;;  %v3488_v32 = vld [vmem:[%s4205_s6 + $0x20] sm:$0xff]   ;;  %v3490_v10 = vld [vmem:[%s4205_s6 + $0x30] sm:$0xff]   ;;  %v3495_v18 = vld [vmem:[%s4205_s6 + $0x58] sm:$0xff]  }
 0x4e0   :  { %v2100_v23 = vadd.f32 %v2099_v21, %v2098_v11  ;;  %v2120_v22 = vrot.slane %v2119_v13, 2  ;;  %v2187_v24 = vadd.f32 %v2178_v6, %v2168_v20  ;;  %v3491_v11 = vld [vmem:[%s4205_s6 + $0x38] sm:$0xff]   ;;  %v3492_v14 = vld [vmem:[%s4205_s6 + $0x40] sm:$0xff]   ;;  %v3494_v6 = vld [vmem:[%s4205_s6 + $0x50] sm:$0xff]  }
 0x4e1   :  { %vm2189_vm13 = vcmp.ge.f32.partialorder %v2186_v29, 0.0  ;;  %v2192_v25 = vmul.f32 0.01, %v2186_v29 }
 0x4e2   :  { %v2101_v26 = vrot.slane %v2100_v23, 1  ;;  %v2121_v27 = vadd.f32 %v2120_v22, %v2119_v13  ;;  %vm2190_vm14 = vcmp.ge.f32.partialorder %v2187_v24, 0.0  ;;  %v2193_v28 = vmul.f32 0.01, %v2187_v24 }
 0x4e3   :  { %v2195_v30 = vsel %vm2189_vm13, %v2186_v29, %v2192_v25 }
 0x4e4   :  { %v2102_v31 = vadd.f32 %v2101_v26, %v2100_v23  ;;  %v2122_v33 = vrot.slane %v2121_v27, 1  ;;  %v2196_v34 = vsel %vm2190_vm14, %v2187_v24, %v2193_v28  ;;  %v2198_v38 = vpack.c.bf16 %v2195_v30, %v2195_v30 }
 0x4e5   :  { %v2199_v35 = vpack.c.bf16 %v2196_v34, %v2196_v34 }
 0x4e6   :  { %v2123_v37 = vadd.f32 %v2122_v33, %v2121_v27  ;;  %v2126_v5 = vmul.f32 0.125, %v2102_v31 }
 0x4e7   :  { %2521 = vmatprep.mubr.bf16.mxu1 %v2199_v35 }
 0x4e8   :  { %v2129_v40 = vmul.f32 0.125, %v2123_v37  ;;  %v2132_v41 = vmul.f32 %v2126_v5, %v2126_v5  ;;  %2522 = vmatmul.mubr.bf16.vlgmr.msra.gmra.mrb[24].mxu1 %v2198_v38  ;;  %v2141_v52 = vsub.f32 %v4055_v15, %v2126_v5  ;;  %v3483_v15 = vld [vmem:[%s4204_s5 + $0x174] ss:$8 sps:$4 sm:$0xff]   ;;  %s2830_s5 = sshll.u32 %s3586_s15, 4  ;;  %s2831_s5 = int_to_ptr.vmem [resolvable:$true] %s2830_s5 }
 0x4e9   :  { %2531 = vmatpush1.bf16.msra.mxu1 %v3460_v36  ;;  %2562 = vmatprep.mubr.bf16.mxu1 %v3583_v0  ;;  %p3559_p9 = scmp.lt.s32.totalorder %s2831_s5, %s2831_s5 }
 0x4ea   :  { %v2135_v42 = vsub.f32 %v2129_v40, %v2132_v41  ;;  %2532 = vmatprep.subr.bf16.mxu1 %v3465_v39 }
 0x4ec   :  { %v2138_v44 = vmax.f32 %v2135_v42, 0.0 }
 0x4ed   :  { %2533 = vmatpush1.bf16.msra.mxu1 %v3463_v8 }
 0x4ee   :  { %v2144_v46 = vadd.f32 1e-05, %v2138_v44  ;;  %2534 = vmatprep.subr.bf16.mxu1 %v3468_v43 }
 0x4f0   :  { %3522 = vrsqrt.f32 %v2144_v46 }
 0x4f1   :  { %2535 = vmatpush1.bf16.msra.mxu1 %v3466_v45 }
 0x4f2   :  { %2536 = vmatprep.subr.bf16.mxu1 %v3471_v47 }
 0x4f5   :  { %2537 = vmatpush1.bf16.msra.mxu1 %v3469_v48 }
 0x4f6   :  { %2538 = vmatprep.subr.bf16.mxu1 %v3474_v49 }
 0x4f9   :  { %2539 = vmatpush1.bf16.msra.mxu1 %v3472_v50 }
 0x4fa   :  { %v3523_v55 = vpop.eup %3522  ;;  %2540 = vmatprep.subr.bf16.mxu1 %v3477_v51 }
 0x4fb   :  { %v2150_v58 = vmul.f32 %v3523_v55, %v2141_v52 }
 0x4fd   :  { %v2169_v60 = vmul.f32 %v2163_v53, %v2150_v58  ;;  %2541 = vmatpush1.bf16.msra.mxu1 %v3475_v54 }
 0x4fe   :  { %2542 = vmatprep.subr.bf16.mxu1 %v3480_v56 }
 0x4ff   :  { %v2188_v61 = vadd.f32 %v2182_v59, %v2169_v60 }
 0x501   :  { %2543 = vmatpush1.bf16.msra.mxu1 %v3478_v57  ;;  %vm2191_vm15 = vcmp.ge.f32.partialorder %v2188_v61, 0.0  ;;  %v2194_v63 = vmul.f32 0.01, %v2188_v61 }
 0x502   :  { %2544 = vmatprep.subr.bf16.mxu1 %v3483_v15 }
 0x503   :  { %v2197_v4 = vsel %vm2191_vm15, %v2188_v61, %v2194_v63  ;;  %v3082_v61 = vld [vmem:[%s4206_s7 + $0x1c] ss:$2 sm:$0x3] }
 0x504   :  { %v2200_v19 = vpack.c.bf16 %v2197_v4, %v2197_v4  ;;  %v2626_v4 = vrot.slane %v3082_v61, %v3730_v12 }
 0x505   :  { %2545 = vmatpush1.bf16.msra.mxu1 %v3481_v62  ;;  %v3083_v62 = vld [vmem:[%s4206_s7 + $0x1d] ss:$2 sm:$0x3] }
 0x506   :  { %2760 = vmatprep.subr.bf16.mxu1 %v3583_v0 }
 0x508   :  { %2563 = vmatmul.mubr.bf16.vlgmr.msra.gmra.mrb[24].mxu1 %v2200_v19 }
 0x509   :  { %2761 = vmatpush1.bf16.msra.mxu1 %v3484_v1 }
 0x50a   :  { %2762 = vmatprep.subr.bf16.mxu1 %v3583_v0 }
 0x50d   :  { %2763 = vmatpush1.bf16.msra.mxu1 %v3485_v2  ;;  %v2639_v2 = vrot.slane %v3083_v62, %v3730_v12 }
 0x50e   :  { %2764 = vmatprep.subr.bf16.mxu1 %v3583_v0 }
 0x511   :  { %2765 = vmatpush1.bf16.msra.mxu1 %v3486_v3 }
 0x512   :  { %2766 = vmatprep.subr.bf16.mxu1 %v3583_v0 }
 0x515   :  { %2767 = vmatpush1.bf16.msra.mxu1 %v3487_v7  ;;  %v2630_v7 = vrot.slane %v3082_v61, %v3740_v17 }
 0x516   :  { %2768 = vmatprep.subr.bf16.mxu1 %v3583_v0 }
 0x519   :  { %2769 = vmatpush1.bf16.msra.mxu1 %v3488_v32 }
 0x51a   :  { %2770 = vmatprep.subr.bf16.mxu1 %v3583_v0 }
 0x51d   :  { %2771 = vmatpush1.bf16.msra.mxu1 %v3489_v9 }
 0x51e   :  { %2772 = vmatprep.subr.bf16.mxu1 %v3583_v0 }
 0x521   :  { %2773 = vmatpush1.bf16.msra.mxu1 %v3490_v10 }
 0x522   :  { %2774 = vmatprep.subr.bf16.mxu1 %v3583_v0 }
 0x525   :  { %2775 = vmatpush1.bf16.msra.mxu1 %v3491_v11  ;;  %v2643_v11 = vrot.slane %v3083_v62, %v3740_v17 }
 0x526   :  { %2776 = vmatprep.subr.bf16.mxu1 %v3583_v0 }
 0x529   :  { %2777 = vmatpush1.bf16.msra.mxu1 %v3492_v14 }
 0x52a   :  { %2778 = vmatprep.subr.bf16.mxu1 %v3583_v0 }
 0x52d   :  { %2779 = vmatpush1.bf16.msra.mxu1 %v3493_v16 }
 0x52e   :  { %2780 = vmatprep.subr.bf16.mxu1 %v3583_v0 }
 0x531   :  { %2781 = vmatpush1.bf16.msra.mxu1 %v3494_v6 }
 0x532   :  { %2782 = vmatprep.subr.bf16.mxu1 %v3583_v0 }
 0x535   :  { %2783 = vmatpush1.bf16.msra.mxu1 %v3495_v18 }
 0x5db   :  { %v2564_v20 = vpop.f32.mrb[24].mxu1 }
 0x5dc   :  { %v2575_v21 = vrot.slane %v2564_v20, 4  ;;  %v2589_v13 = vmul.f32 %v2564_v20, %v2564_v20  ;;  %v2566_v29 = vpop.f32.mrb[25].mxu1 }
 0x5dd   :  { %v2582_v23 = vsel %vm2581_vm0, %v2566_v29, 0.0  ;;  %v2590_v22 = vmul.f32 %v2566_v29, %v2566_v29  ;;  %v2568_v24 = vpop.f32.mrb[26].mxu1 }
 0x5de   :  { %v2576_v25 = vadd.f32 %v2575_v21, %v2564_v20  ;;  %v2591_v26 = vrot.slane %v2589_v13, 4  ;;  %v2583_v27 = vrot.slane %v2582_v23, 4  ;;  %v2569_v28 = vpop.f32.mrb[27].mxu1 }
 0x5df   :  { %v2597_v30 = vsel %vm2581_vm0, %v2590_v22, 0.0 }
 0x5e0   :  { %v2577_v31 = vrot.slane %v2576_v25, 2  ;;  %v2592_v33 = vadd.f32 %v2591_v26, %v2589_v13  ;;  %v2584_v34 = vadd.f32 %v2583_v27, %v2582_v23  ;;  %v2598_v35 = vrot.slane %v2597_v30, 4 }
 0x5e2   :  { %v2578_v36 = vadd.f32 %v2577_v31, %v2576_v25  ;;  %v2593_v37 = vrot.slane %v2592_v33, 2  ;;  %v2585_v5 = vrot.slane %v2584_v34, 2  ;;  %v2599_v38 = vadd.f32 %v2598_v35, %v2597_v30 }
 0x5e4   :  { %v2579_v39 = vrot.slane %v2578_v36, 1  ;;  %v2594_v40 = vadd.f32 %v2593_v37, %v2592_v33  ;;  %v2586_v41 = vadd.f32 %v2585_v5, %v2584_v34  ;;  %v2600_v8 = vrot.slane %v2599_v38, 2  ;;  %v2814_v34 = vld [vmem:[%s4206_s7 + $0x23] sm:$0x1] }
 0x5e5   :  { %vm2815_vm3 = vcmp.gt.f32.partialorder %v2814_v34, 0.5 }
 0x5e6   :  { %v2580_v42 = vadd.f32 %v2579_v39, %v2578_v36  ;;  %v2595_v43 = vrot.slane %v2594_v40, 1  ;;  %v2587_v44 = vrot.slane %v2586_v41, 1  ;;  %v2601_v45 = vadd.f32 %v2600_v8, %v2599_v38 }
 0x5e7   :  { %v2816_v36 = vsel %vm2815_vm3, 1, %v3583_v0 }
 0x5e8   :  { %v2596_v46 = vadd.f32 %v2595_v43, %v2594_v40  ;;  %v2604_v47 = vmul.f32 0.125, %v2580_v42  ;;  %v2588_v48 = vadd.f32 %v2587_v44, %v2586_v41  ;;  %v2602_v49 = vrot.slane %v2601_v45, 1 }
 0x5e9   :  { %v2820_v38 = vrot.slane %v2816_v36, %v3730_v12 }
 0x5ea   :  { %v2606_v50 = vmul.f32 0.125, %v2596_v46  ;;  %v2608_v51 = vmul.f32 %v2604_v47, %v2604_v47  ;;  %v2603_v52 = vadd.f32 %v2602_v49, %v2601_v45  ;;  %v2605_v53 = vmul.f32 0.125, %v2588_v48 }
 0x5eb   :  { %v2614_v63 = vsub.f32 %v2564_v20, %v2604_v47  ;;  %vm2821_vm5 = vcmp.eq.s32.totalorder %v2820_v38, 1 }
 0x5ec   :  { %v2610_v54 = vsub.f32 %v2606_v50, %v2608_v51  ;;  %v2607_v55 = vmul.f32 0.125, %v2603_v52  ;;  %v2609_v56 = vmul.f32 %v2605_v53, %v2605_v53  ;;  %v2615_v3 = vsub.f32 %v2566_v29, %v2605_v53  ;;  %v3084_v29 = vld [vmem:[%s4206_s7 + $0x21] ss:$0 sm:$0xff]  ;;  %s3554_s7 = scalar_lea.vmem %s2831_s5, 128 }
 0x5ed   :  { %p3555_p8 = scmp.ne.s32.totalorder %s2831_s5, %s3554_s7  ;;  %p3560_p10 = scmp.lt.s32.totalorder %s3554_s7, %s3554_s7 }
 0x5ee   :  { %v2612_v58 = vmax.f32 %v2610_v54, 0.0  ;;  %v2611_v59 = vsub.f32 %v2607_v55, %v2609_v56 }
 0x5ef   :  { %p3561_p11 = por %p3560_p10, %p3559_p9 }
 0x5f0   :  { %v2616_v60 = vadd.f32 1e-05, %v2612_v58  ;;  %v2613_v57 = vmax.f32 %v2611_v59, 0.0 }
 0x5f1   :  { %p3562_p12 = pnand %p3561_p11, %p3555_p8 }
 0x5f2   :  { %3524 = vrsqrt.f32 %v2616_v60  ;;  %v2617_v15 = vadd.f32 1e-05, %v2613_v57 }
 0x5f4   :  { %3526 = vrsqrt.f32 %v2617_v15 }
 0x5fc   :  { %v3525_v19 = vpop.eup %3524 }
 0x5fd   :  { %v2620_v1 = vmul.f32 %v3525_v19, %v2614_v63 }
 0x5fe   :  { %v3527_v32 = vpop.eup %3526 }
 0x5ff   :  { %v2633_v9 = vmul.f32 %v2626_v4, %v2620_v1  ;;  %v2621_v10 = vmul.f32 %v3527_v32, %v2615_v3 }
 0x601   :  { %v2646_v14 = vadd.f32 %v2639_v2, %v2633_v9  ;;  %v2634_v16 = vmul.f32 %v2630_v7, %v2621_v10 }
 0x603   :  { %v2650_v6 = vmul.f32 0.01, %v2646_v14  ;;  %v2647_v18 = vadd.f32 %v2643_v11, %v2634_v16  ;;  %vm2648_vm1 = vcmp.ge.f32.partialorder %v2646_v14, 0.0 }
 0x605   :  { %vm2649_vm2 = vcmp.ge.f32.partialorder %v2647_v18, 0.0  ;;  %v2651_v20 = vmul.f32 0.01, %v2647_v18  ;;  %v2652_v21 = vsel %vm2648_vm1, %v2646_v14, %v2650_v6 }
 0x606   :  { %v2654_v22 = vpack.c.bf16 %v2652_v21, %v2652_v21 }
 0x607   :  { %v2653_v13 = vsel %vm2649_vm2, %v2647_v18, %v2651_v20 }
 0x608   :  { %v2655_v23 = vpack.c.bf16 %v2653_v13, %v2653_v13 }
 0x60a   :  { %3097 = vmatprep.mubr.msk.bf16.mxu1 %vm2581_vm0, %v2655_v23 }
 0x60b   :  { %2793 = vmatmul.mubr.bf16.vlgmr.msra.gmra.mrb[28].mxu1 %v2654_v22 }
 0x6de   :  { %v2794_v24 = vpop.f32.mrb[28].mxu1 }
 0x6df   :  { %v2795_v17 = vadd.f32 %v3084_v29, %v2794_v24  ;;  %v2796_v25 = vpop.f32.mrb[29].mxu1 }
 0x6e0   :  { %v2797_v26 = vpop.f32.mrb[30].mxu1 }
 0x6e1   :  { %v2801_v27 = vmin.f32 %v2795_v17, 20.0  ;;  %v2798_v28 = vpop.f32.mrb[31].mxu1  ;;  %vm2800_vm6 = vcmp.gt.f32.partialorder %v2795_v17, 20.0 }
 0x6e3   :  { %v2802_v30 = vmul.f32 1.442695, %v2801_v27 }
 0x6e5   :  { %3528 = vpow2.f32 %v2802_v30 }
 0x6ef   :  { %v3529_v31 = vpop.eup %3528 }
 0x6f0   :  { %v2804_v33 = vadd.f32 1.0, %v3529_v31  ;;  %v2807_v35 = vmul.f32 -0.5, %v3529_v31  ;;  %v2810_v5 = vand.u32 2147483647, %v3529_v31 }
 0x6f2   :  { %3530 = vlog2.f32 %v2804_v33  ;;  %v2808_v37 = vadd.f32 1.0, %v2807_v35  ;;  %vm2811_vm4 = vcmp.lt.f32.partialorder %v2810_v5, 0.0004427343 }
 0x6f4   :  { %v2809_v41 = vmul.f32 %v3529_v31, %v2808_v37 }
 0x6fc   :  { %v3531_v39 = vpop.eup %3530 }
 0x6fd   :  { %v2806_v40 = vmul.f32 0.6931472, %v3531_v39 }
 0x6ff   :  { %v2812_v8 = vsel %vm2811_vm4, %v2809_v41, %v2806_v40 }
 0x700   :  { %v2813_v42 = vsel %vm2800_vm6, %v2795_v17, %v2812_v8 }
 0x701   :  { %v2822_v43 = vsel %vm2821_vm5, %v2795_v17, %v2813_v42 }
 0x702   :  { %2823 = vst [vmem:[#allocation5] sm:$0xff] %v2822_v43 }
 0x703   :  { %3565 = shalt.err (!%p3562_p12)
}
 0x704   :  { %s3566_s17 = scalar_lea.hbm %s4207_s8, 128 }
 0x705   :  { %p3567_p13 = scmp.ne.s32.totalorder %s4207_s8, %s3566_s17  ;;  %p3570_p0 = scmp.lt.u32.totalorder %s3566_s17, %s4207_s8 }
 0x707   :  { %p3572_p1 = pnand %p3570_p0, %p3567_p13 }
 0x709   :  { %3575 = shalt.err (!%p3572_p1)
}
 0x70a   :  { %2833 = dma.vmem_to_hbm [thread:$0]  %s2831_s5, 128, %s4207_s8, [#allocation4]  }
 0x70b   :  { %3578 = dma.done.wait [#allocation4], 128  }
 0x70c   :  { %3579 = vsyncadd [#allocation4], 4294967168 }
 0x70d   :  { %2837 = vsyncpa [#allocation3], 1 }
 0x70e   :  { %2838 = vsyncpa [#allocation4], 1 }

</bundles_post_ra>
